<compile_context>
chip_gen: v7x
topology: tpu7x:2x2x1
jax: 0.10.0
libtpu: 0.0.40
codegen_flags: <defaults>
</compile_context>

<pallas_src>
import jax
import jax.numpy as jnp
from jax.experimental import pallas as pl
from jax.experimental.pallas import tpu as pltpu


def lstm_sentiment_kernel(tok_ref, emb_ref, w_ih_ref, bias_ref, w_hh_ref,
                          w_fc_ref, b_fc_ref, out_ref):
    """tok_ref : [B, T]  int32 token ids                         (VMEM)
       emb_ref : [V, E]  f32 embedding table                     (VMEM)
       w_ih_ref: [E, 4H] f32 input weights, gate order [i,f,o,g] (VMEM)
       bias_ref: [1, 4H] f32 (b_ih + b_hh), gate order [i,f,o,g] (VMEM)
       w_hh_ref: [H, 4H] bf16 recurrent weights, [i,f,o,g]       (VMEM)
       w_fc_ref: [1, H]  f32 classifier weight                   (VMEM)
       b_fc_ref: [1]     f32 classifier bias                     (SMEM)
       out_ref : [B, 1]  f32 sigmoid probabilities               (VMEM)
    """
    B, T = tok_ref.shape
    V, _E = emb_ref.shape
    H = w_hh_ref.shape[0]

    # Embedding lookup + input projection + bias folded into one small table:
    #   table_proj[v] = emb[v] @ W_ih + (b_ih + b_hh)          -> [V, 4H]
    table_proj = jnp.dot(emb_ref[...], w_ih_ref[...],
                         preferred_element_type=jnp.float32) + bias_ref[...]

    toks = tok_ref[...]                                          # [B, T] int32
    vocab_iota = jax.lax.broadcasted_iota(jnp.int32, (B, V), 1)  # [B, V]
    w_hh = w_hh_ref[...]                                         # bf16, loaded once

    def gather_gates(t):
        # One-hot matmul gather: robustly lowerable, rides the MXU, and is
        # independent of h so it stays off the serial critical path.
        tok_t = toks[:, t:t + 1]                                 # [B, 1] (t static)
        onehot = (tok_t == vocab_iota).astype(jnp.float32)       # [B, V]
        return jnp.dot(onehot, table_proj,
                       preferred_element_type=jnp.float32)       # [B, 4H]

    def gate_math(gates, c_prev):
        # Gate order [i, f, o, g]: one contiguous sigmoid slab + one tanh.
        sig = jax.nn.sigmoid(gates[:, :3 * H])                   # [B, 3H]
        i_g = sig[:, 0 * H:1 * H]
        f_g = sig[:, 1 * H:2 * H]
        o_g = sig[:, 2 * H:3 * H]
        g_g = jnp.tanh(gates[:, 3 * H:])
        c_new = f_g * c_prev + i_g * g_g
        h_new = o_g * jnp.tanh(c_new)
        return h_new, c_new

    # Peeled t = 0: h0 == 0 so the recurrent matmul is skipped entirely.
    h, c = gate_math(gather_gates(0), jnp.zeros((B, H), jnp.float32))

    # Remaining steps: only dot(h, w_hh) sits on the serial critical path.
    # T is static and small -> full unroll via a Python loop is fine here.
    for t in range(1, T):
        gates = gather_gates(t) + jnp.dot(h.astype(jnp.bfloat16), w_hh,
                                          preferred_element_type=jnp.float32)
        h, c = gate_math(gates, c)

    # Classifier head: VPU multiply + lane reduction (no N=1 MXU dot),
    # bias from SMEM.
    logit = jnp.sum(h * w_fc_ref[...], axis=-1, keepdims=True) + b_fc_ref[0]
    out_ref[...] = jax.nn.sigmoid(logit)


def sentiment_classifier_forward(token_ids, packed):
    """token_ids: int32 [B, T]; packed: output of pack_params().
    Returns probabilities [B, 1] float32. Hot path: a single pallas_call."""
    B, _T = token_ids.shape
    vmem = pl.BlockSpec(memory_space=pltpu.MemorySpace.VMEM)
    smem = pl.BlockSpec(memory_space=pltpu.MemorySpace.SMEM)
    return pl.pallas_call(
        lstm_sentiment_kernel,
        out_shape=jax.ShapeDtypeStruct((B, 1), jnp.float32),
        in_specs=[vmem, vmem, vmem, vmem, vmem, vmem, smem],
        out_specs=vmem,
    )(token_ids, packed["emb"], packed["w_ih"], packed["bias"],
      packed["w_hh"], packed["w_fc"], packed["b_fc"])


def init_params(key, vocab_size, embed_dim, hidden_dim):
    """PyTorch-convention layout (weight_ih/hh: [4H, *], gate order i,f,g,o),
    uniform +/- 1/sqrt(H) like nn.LSTM / nn.Linear defaults."""
    ks = jax.random.split(key, 7)
    bound = 1.0 / float(hidden_dim) ** 0.5
    u = lambda k, s: jax.random.uniform(k, s, jnp.float32,
                                        minval=-bound, maxval=bound)
    return {
        "embedding": jax.random.normal(ks[0], (vocab_size, embed_dim), jnp.float32),
        "weight_ih": u(ks[1], (4 * hidden_dim, embed_dim)),
        "weight_hh": u(ks[2], (4 * hidden_dim, hidden_dim)),
        "bias_ih":   u(ks[3], (4 * hidden_dim,)),
        "bias_hh":   u(ks[4], (4 * hidden_dim,)),
        "fc_weight": u(ks[5], (1, hidden_dim)),
        "fc_bias":   u(ks[6], (1,)),
    }


def pack_params(params):
    """One-time conversion PyTorch layout -> kernel layout:
    transpose to right-multiply form, reorder gates [i,f,g,o] -> [i,f,o,g],
    sum the two LSTM biases, cast w_hh to bf16 for the MXU."""
    def reorder_rows(w):                       # w: [4H, X], rows [Wi;Wf;Wg;Wo]
        wi, wf, wg, wo = jnp.split(w, 4, axis=0)
        return jnp.concatenate([wi, wf, wo, wg], axis=0)

    h4 = params["weight_hh"].shape[0]
    b = params["bias_ih"] + params["bias_hh"]
    bi, bf, bg, bo = jnp.split(b, 4)
    bias = jnp.concatenate([bi, bf, bo, bg]).reshape(1, h4).astype(jnp.float32)

    return {
        "emb":  params["embedding"].astype(jnp.float32),                    # [V, E]
        "w_ih": reorder_rows(params["weight_ih"]).T.astype(jnp.float32),    # [E, 4H]
        "w_hh": reorder_rows(params["weight_hh"]).T.astype(jnp.bfloat16),   # [H, 4H]
        "bias": bias,                                                       # [1, 4H]
        "w_fc": params["fc_weight"].astype(jnp.float32),                    # [1, H]
        "b_fc": params["fc_bias"].astype(jnp.float32).reshape((1,)),        # [1]
    }


def reference_forward(token_ids, params):
    """Pure-JAX f32 reference with PyTorch LSTM semantics (gate order i,f,g,o)."""
    emb = params["embedding"][token_ids]                     # [B, T, E]
    w_ih, w_hh = params["weight_ih"], params["weight_hh"]    # [4H,E], [4H,H]
    b = params["bias_ih"] + params["bias_hh"]
    H = w_hh.shape[1]
    B, T, _ = emb.shape
    h = jnp.zeros((B, H), jnp.float32)
    c = jnp.zeros((B, H), jnp.float32)
    for t in range(T):
        gates = emb[:, t] @ w_ih.T + h @ w_hh.T + b
        i = jax.nn.sigmoid(gates[:, 0 * H:1 * H])
        f = jax.nn.sigmoid(gates[:, 1 * H:2 * H])
        g = jnp.tanh(gates[:, 2 * H:3 * H])
        o = jax.nn.sigmoid(gates[:, 3 * H:4 * H])
        c = f * c + i * g
        h = o * jnp.tanh(c)
    logit = h @ params["fc_weight"].T + params["fc_bias"]
    return jax.nn.sigmoid(logit)


if __name__ == "__main__":
    VOCAB = 50
    EMBED = 128
    HIDDEN = 128
    BATCH = 8
    SEQ = 8

    key = jax.random.PRNGKey(0)
    pkey, xkey = jax.random.split(key)
    params = init_params(pkey, VOCAB, EMBED, HIDDEN)
    packed = pack_params(params)
    token_ids = jax.random.randint(xkey, (BATCH, SEQ), 0, VOCAB, dtype=jnp.int32)

    probs = sentiment_classifier_forward(token_ids, packed)
    jax.block_until_ready(probs)

    assert probs.shape == (BATCH, 1)
    assert bool(jnp.all((probs >= 0.0) & (probs <= 1.0)))

    # Correctness vs. pure-JAX f32 reference (loose tol: w_hh matmul is bf16).
    ref = reference_forward(token_ids, params)
    max_err = float(jnp.max(jnp.abs(probs - ref)))
    assert max_err < 5e-2, f"kernel/reference mismatch: max_err={max_err}"

    print("KERNEL_OK")
</pallas_src>

<mosaic_0001>
module attributes {stable_mosaic.version = 11 : i64} {
  func.func @lstm_sentiment_kernel(%arg0: memref<8x8xi32, #tpu.memory_space<vmem>>, %arg1: memref<50x128xf32, #tpu.memory_space<vmem>>, %arg2: memref<128x512xf32, #tpu.memory_space<vmem>>, %arg3: memref<1x512xf32, #tpu.memory_space<vmem>>, %arg4: memref<128x512xbf16, #tpu.memory_space<vmem>>, %arg5: memref<1x128xf32, #tpu.memory_space<vmem>>, %arg6: memref<1xf32, #tpu.memory_space<smem>>, %arg7: memref<8x1xf32, #tpu.memory_space<vmem>>) attributes {dimension_semantics = [], scalar_prefetch = 0 : i64, scratch_operands = 0 : i64, tpu.core_type = #tpu.core_type<tc>} {
    %c0 = arith.constant 0 : index
    %c0_0 = arith.constant 0 : index
    %0 = vector.load %arg1[%c0, %c0_0] : memref<50x128xf32, #tpu.memory_space<vmem>>, vector<50x128xf32>
    %c0_1 = arith.constant 0 : index
    %c0_2 = arith.constant 0 : index
    %1 = vector.load %arg2[%c0_1, %c0_2] : memref<128x512xf32, #tpu.memory_space<vmem>>, vector<128x512xf32>
    %cst = arith.constant dense<0.000000e+00> : vector<50x512xf32>
    %2 = tpu.matmul %0, %1, %cst {dimension_numbers = #tpu.dot_dimension_numbers<[1], [0], [0], [1], [0, 0, 1, 1], [], []>} : vector<50x128xf32>, vector<128x512xf32>, vector<50x512xf32> -> vector<50x512xf32>
    %c0_3 = arith.constant 0 : index
    %c0_4 = arith.constant 0 : index
    %3 = vector.load %arg3[%c0_3, %c0_4] : memref<1x512xf32, #tpu.memory_space<vmem>>, vector<1x512xf32>
    %4 = vector.broadcast %3 : vector<1x512xf32> to vector<50x512xf32>
    %5 = arith.addf %2, %4 : vector<50x512xf32>
    %c0_5 = arith.constant 0 : index
    %c0_6 = arith.constant 0 : index
    %6 = vector.load %arg0[%c0_5, %c0_6] : memref<8x8xi32, #tpu.memory_space<vmem>>, vector<8x8xi32>
    %7 = tpu.iota {dimensions = array<i32: 1>} : vector<8x50xi32>
    %c0_7 = arith.constant 0 : index
    %c0_8 = arith.constant 0 : index
    %8 = vector.load %arg4[%c0_7, %c0_8] : memref<128x512xbf16, #tpu.memory_space<vmem>>, vector<128x512xbf16>
    %9 = vector.extract_strided_slice %6 {offsets = [0, 0], sizes = [8, 1], strides = [1, 1]} : vector<8x8xi32> to vector<8x1xi32>
    %10 = vector.broadcast %9 : vector<8x1xi32> to vector<8x50xi32>
    %11 = arith.cmpi eq, %10, %7 : vector<8x50xi32>
    %12 = arith.extui %11 : vector<8x50xi1> to vector<8x50xi32>
    %13 = arith.sitofp %12 : vector<8x50xi32> to vector<8x50xf32>
    %cst_9 = arith.constant dense<0.000000e+00> : vector<8x512xf32>
    %14 = tpu.matmul %13, %5, %cst_9 {dimension_numbers = #tpu.dot_dimension_numbers<[1], [0], [0], [1], [0, 0, 1, 1], [], []>} : vector<8x50xf32>, vector<50x512xf32>, vector<8x512xf32> -> vector<8x512xf32>
    %cst_10 = arith.constant 0.000000e+00 : f32
    %15 = vector.broadcast %cst_10 : f32 to vector<8x128xf32>
    %16 = vector.extract_strided_slice %14 {offsets = [0, 0], sizes = [8, 384], strides = [1, 1]} : vector<8x512xf32> to vector<8x384xf32>
    %17 = arith.negf %16 : vector<8x384xf32>
    %18 = math.exp %17 : vector<8x384xf32>
    %cst_11 = arith.constant 1.000000e+00 : f32
    %19 = vector.broadcast %cst_11 : f32 to vector<8x384xf32>
    %20 = arith.addf %19, %18 : vector<8x384xf32>
    %21 = arith.divf %19, %20 : vector<8x384xf32>
    %22 = vector.extract_strided_slice %21 {offsets = [0, 0], sizes = [8, 128], strides = [1, 1]} : vector<8x384xf32> to vector<8x128xf32>
    %23 = vector.extract_strided_slice %21 {offsets = [0, 128], sizes = [8, 128], strides = [1, 1]} : vector<8x384xf32> to vector<8x128xf32>
    %24 = vector.extract_strided_slice %21 {offsets = [0, 256], sizes = [8, 128], strides = [1, 1]} : vector<8x384xf32> to vector<8x128xf32>
    %25 = vector.extract_strided_slice %14 {offsets = [0, 384], sizes = [8, 128], strides = [1, 1]} : vector<8x512xf32> to vector<8x128xf32>
    %26 = math.tanh %25 : vector<8x128xf32>
    %27 = arith.mulf %23, %15 : vector<8x128xf32>
    %28 = arith.mulf %22, %26 : vector<8x128xf32>
    %29 = arith.addf %27, %28 : vector<8x128xf32>
    %30 = math.tanh %29 : vector<8x128xf32>
    %31 = arith.mulf %24, %30 : vector<8x128xf32>
    %32 = vector.extract_strided_slice %6 {offsets = [0, 1], sizes = [8, 1], strides = [1, 1]} : vector<8x8xi32> to vector<8x1xi32>
    %33 = vector.broadcast %32 : vector<8x1xi32> to vector<8x50xi32>
    %34 = arith.cmpi eq, %33, %7 : vector<8x50xi32>
    %35 = arith.extui %34 : vector<8x50xi1> to vector<8x50xi32>
    %36 = arith.sitofp %35 : vector<8x50xi32> to vector<8x50xf32>
    %cst_12 = arith.constant dense<0.000000e+00> : vector<8x512xf32>
    %37 = tpu.matmul %36, %5, %cst_12 {dimension_numbers = #tpu.dot_dimension_numbers<[1], [0], [0], [1], [0, 0, 1, 1], [], []>} : vector<8x50xf32>, vector<50x512xf32>, vector<8x512xf32> -> vector<8x512xf32>
    %38 = arith.truncf %31 : vector<8x128xf32> to vector<8x128xbf16>
    %cst_13 = arith.constant dense<0.000000e+00> : vector<8x512xf32>
    %39 = tpu.matmul %38, %8, %cst_13 {dimension_numbers = #tpu.dot_dimension_numbers<[1], [0], [0], [1], [0, 0, 1, 1], [], []>} : vector<8x128xbf16>, vector<128x512xbf16>, vector<8x512xf32> -> vector<8x512xf32>
    %40 = arith.addf %37, %39 : vector<8x512xf32>
    %41 = vector.extract_strided_slice %40 {offsets = [0, 0], sizes = [8, 384], strides = [1, 1]} : vector<8x512xf32> to vector<8x384xf32>
    %42 = arith.negf %41 : vector<8x384xf32>
    %43 = math.exp %42 : vector<8x384xf32>
    %cst_14 = arith.constant 1.000000e+00 : f32
    %44 = vector.broadcast %cst_14 : f32 to vector<8x384xf32>
    %45 = arith.addf %44, %43 : vector<8x384xf32>
    %46 = arith.divf %44, %45 : vector<8x384xf32>
    %47 = vector.extract_strided_slice %46 {offsets = [0, 0], sizes = [8, 128], strides = [1, 1]} : vector<8x384xf32> to vector<8x128xf32>
    %48 = vector.extract_strided_slice %46 {offsets = [0, 128], sizes = [8, 128], strides = [1, 1]} : vector<8x384xf32> to vector<8x128xf32>
    %49 = vector.extract_strided_slice %46 {offsets = [0, 256], sizes = [8, 128], strides = [1, 1]} : vector<8x384xf32> to vector<8x128xf32>
    %50 = vector.extract_strided_slice %40 {offsets = [0, 384], sizes = [8, 128], strides = [1, 1]} : vector<8x512xf32> to vector<8x128xf32>
    %51 = math.tanh %50 : vector<8x128xf32>
    %52 = arith.mulf %48, %29 : vector<8x128xf32>
    %53 = arith.mulf %47, %51 : vector<8x128xf32>
    %54 = arith.addf %52, %53 : vector<8x128xf32>
    %55 = math.tanh %54 : vector<8x128xf32>
    %56 = arith.mulf %49, %55 : vector<8x128xf32>
    %57 = vector.extract_strided_slice %6 {offsets = [0, 2], sizes = [8, 1], strides = [1, 1]} : vector<8x8xi32> to vector<8x1xi32>
    %58 = vector.broadcast %57 : vector<8x1xi32> to vector<8x50xi32>
    %59 = arith.cmpi eq, %58, %7 : vector<8x50xi32>
    %60 = arith.extui %59 : vector<8x50xi1> to vector<8x50xi32>
    %61 = arith.sitofp %60 : vector<8x50xi32> to vector<8x50xf32>
    %cst_15 = arith.constant dense<0.000000e+00> : vector<8x512xf32>
    %62 = tpu.matmul %61, %5, %cst_15 {dimension_numbers = #tpu.dot_dimension_numbers<[1], [0], [0], [1], [0, 0, 1, 1], [], []>} : vector<8x50xf32>, vector<50x512xf32>, vector<8x512xf32> -> vector<8x512xf32>
    %63 = arith.truncf %56 : vector<8x128xf32> to vector<8x128xbf16>
    %cst_16 = arith.constant dense<0.000000e+00> : vector<8x512xf32>
    %64 = tpu.matmul %63, %8, %cst_16 {dimension_numbers = #tpu.dot_dimension_numbers<[1], [0], [0], [1], [0, 0, 1, 1], [], []>} : vector<8x128xbf16>, vector<128x512xbf16>, vector<8x512xf32> -> vector<8x512xf32>
    %65 = arith.addf %62, %64 : vector<8x512xf32>
    %66 = vector.extract_strided_slice %65 {offsets = [0, 0], sizes = [8, 384], strides = [1, 1]} : vector<8x512xf32> to vector<8x384xf32>
    %67 = arith.negf %66 : vector<8x384xf32>
    %68 = math.exp %67 : vector<8x384xf32>
    %cst_17 = arith.constant 1.000000e+00 : f32
    %69 = vector.broadcast %cst_17 : f32 to vector<8x384xf32>
    %70 = arith.addf %69, %68 : vector<8x384xf32>
    %71 = arith.divf %69, %70 : vector<8x384xf32>
    %72 = vector.extract_strided_slice %71 {offsets = [0, 0], sizes = [8, 128], strides = [1, 1]} : vector<8x384xf32> to vector<8x128xf32>
    %73 = vector.extract_strided_slice %71 {offsets = [0, 128], sizes = [8, 128], strides = [1, 1]} : vector<8x384xf32> to vector<8x128xf32>
    %74 = vector.extract_strided_slice %71 {offsets = [0, 256], sizes = [8, 128], strides = [1, 1]} : vector<8x384xf32> to vector<8x128xf32>
    %75 = vector.extract_strided_slice %65 {offsets = [0, 384], sizes = [8, 128], strides = [1, 1]} : vector<8x512xf32> to vector<8x128xf32>
    %76 = math.tanh %75 : vector<8x128xf32>
    %77 = arith.mulf %73, %54 : vector<8x128xf32>
    %78 = arith.mulf %72, %76 : vector<8x128xf32>
    %79 = arith.addf %77, %78 : vector<8x128xf32>
    %80 = math.tanh %79 : vector<8x128xf32>
    %81 = arith.mulf %74, %80 : vector<8x128xf32>
    %82 = vector.extract_strided_slice %6 {offsets = [0, 3], sizes = [8, 1], strides = [1, 1]} : vector<8x8xi32> to vector<8x1xi32>
    %83 = vector.broadcast %82 : vector<8x1xi32> to vector<8x50xi32>
    %84 = arith.cmpi eq, %83, %7 : vector<8x50xi32>
    %85 = arith.extui %84 : vector<8x50xi1> to vector<8x50xi32>
    %86 = arith.sitofp %85 : vector<8x50xi32> to vector<8x50xf32>
    %cst_18 = arith.constant dense<0.000000e+00> : vector<8x512xf32>
    %87 = tpu.matmul %86, %5, %cst_18 {dimension_numbers = #tpu.dot_dimension_numbers<[1], [0], [0], [1], [0, 0, 1, 1], [], []>} : vector<8x50xf32>, vector<50x512xf32>, vector<8x512xf32> -> vector<8x512xf32>
    %88 = arith.truncf %81 : vector<8x128xf32> to vector<8x128xbf16>
    %cst_19 = arith.constant dense<0.000000e+00> : vector<8x512xf32>
    %89 = tpu.matmul %88, %8, %cst_19 {dimension_numbers = #tpu.dot_dimension_numbers<[1], [0], [0], [1], [0, 0, 1, 1], [], []>} : vector<8x128xbf16>, vector<128x512xbf16>, vector<8x512xf32> -> vector<8x512xf32>
    %90 = arith.addf %87, %89 : vector<8x512xf32>
    %91 = vector.extract_strided_slice %90 {offsets = [0, 0], sizes = [8, 384], strides = [1, 1]} : vector<8x512xf32> to vector<8x384xf32>
    %92 = arith.negf %91 : vector<8x384xf32>
    %93 = math.exp %92 : vector<8x384xf32>
    %cst_20 = arith.constant 1.000000e+00 : f32
    %94 = vector.broadcast %cst_20 : f32 to vector<8x384xf32>
    %95 = arith.addf %94, %93 : vector<8x384xf32>
    %96 = arith.divf %94, %95 : vector<8x384xf32>
    %97 = vector.extract_strided_slice %96 {offsets = [0, 0], sizes = [8, 128], strides = [1, 1]} : vector<8x384xf32> to vector<8x128xf32>
    %98 = vector.extract_strided_slice %96 {offsets = [0, 128], sizes = [8, 128], strides = [1, 1]} : vector<8x384xf32> to vector<8x128xf32>
    %99 = vector.extract_strided_slice %96 {offsets = [0, 256], sizes = [8, 128], strides = [1, 1]} : vector<8x384xf32> to vector<8x128xf32>
    %100 = vector.extract_strided_slice %90 {offsets = [0, 384], sizes = [8, 128], strides = [1, 1]} : vector<8x512xf32> to vector<8x128xf32>
    %101 = math.tanh %100 : vector<8x128xf32>
    %102 = arith.mulf %98, %79 : vector<8x128xf32>
    %103 = arith.mulf %97, %101 : vector<8x128xf32>
    %104 = arith.addf %102, %103 : vector<8x128xf32>
    %105 = math.tanh %104 : vector<8x128xf32>
    %106 = arith.mulf %99, %105 : vector<8x128xf32>
    %107 = vector.extract_strided_slice %6 {offsets = [0, 4], sizes = [8, 1], strides = [1, 1]} : vector<8x8xi32> to vector<8x1xi32>
    %108 = vector.broadcast %107 : vector<8x1xi32> to vector<8x50xi32>
    %109 = arith.cmpi eq, %108, %7 : vector<8x50xi32>
    %110 = arith.extui %109 : vector<8x50xi1> to vector<8x50xi32>
    %111 = arith.sitofp %110 : vector<8x50xi32> to vector<8x50xf32>
    %cst_21 = arith.constant dense<0.000000e+00> : vector<8x512xf32>
    %112 = tpu.matmul %111, %5, %cst_21 {dimension_numbers = #tpu.dot_dimension_numbers<[1], [0], [0], [1], [0, 0, 1, 1], [], []>} : vector<8x50xf32>, vector<50x512xf32>, vector<8x512xf32> -> vector<8x512xf32>
    %113 = arith.truncf %106 : vector<8x128xf32> to vector<8x128xbf16>
    %cst_22 = arith.constant dense<0.000000e+00> : vector<8x512xf32>
    %114 = tpu.matmul %113, %8, %cst_22 {dimension_numbers = #tpu.dot_dimension_numbers<[1], [0], [0], [1], [0, 0, 1, 1], [], []>} : vector<8x128xbf16>, vector<128x512xbf16>, vector<8x512xf32> -> vector<8x512xf32>
    %115 = arith.addf %112, %114 : vector<8x512xf32>
    %116 = vector.extract_strided_slice %115 {offsets = [0, 0], sizes = [8, 384], strides = [1, 1]} : vector<8x512xf32> to vector<8x384xf32>
    %117 = arith.negf %116 : vector<8x384xf32>
    %118 = math.exp %117 : vector<8x384xf32>
    %cst_23 = arith.constant 1.000000e+00 : f32
    %119 = vector.broadcast %cst_23 : f32 to vector<8x384xf32>
    %120 = arith.addf %119, %118 : vector<8x384xf32>
    %121 = arith.divf %119, %120 : vector<8x384xf32>
    %122 = vector.extract_strided_slice %121 {offsets = [0, 0], sizes = [8, 128], strides = [1, 1]} : vector<8x384xf32> to vector<8x128xf32>
    %123 = vector.extract_strided_slice %121 {offsets = [0, 128], sizes = [8, 128], strides = [1, 1]} : vector<8x384xf32> to vector<8x128xf32>
    %124 = vector.extract_strided_slice %121 {offsets = [0, 256], sizes = [8, 128], strides = [1, 1]} : vector<8x384xf32> to vector<8x128xf32>
    %125 = vector.extract_strided_slice %115 {offsets = [0, 384], sizes = [8, 128], strides = [1, 1]} : vector<8x512xf32> to vector<8x128xf32>
    %126 = math.tanh %125 : vector<8x128xf32>
    %127 = arith.mulf %123, %104 : vector<8x128xf32>
    %128 = arith.mulf %122, %126 : vector<8x128xf32>
    %129 = arith.addf %127, %128 : vector<8x128xf32>
    %130 = math.tanh %129 : vector<8x128xf32>
    %131 = arith.mulf %124, %130 : vector<8x128xf32>
    %132 = vector.extract_strided_slice %6 {offsets = [0, 5], sizes = [8, 1], strides = [1, 1]} : vector<8x8xi32> to vector<8x1xi32>
    %133 = vector.broadcast %132 : vector<8x1xi32> to vector<8x50xi32>
    %134 = arith.cmpi eq, %133, %7 : vector<8x50xi32>
    %135 = arith.extui %134 : vector<8x50xi1> to vector<8x50xi32>
    %136 = arith.sitofp %135 : vector<8x50xi32> to vector<8x50xf32>
    %cst_24 = arith.constant dense<0.000000e+00> : vector<8x512xf32>
    %137 = tpu.matmul %136, %5, %cst_24 {dimension_numbers = #tpu.dot_dimension_numbers<[1], [0], [0], [1], [0, 0, 1, 1], [], []>} : vector<8x50xf32>, vector<50x512xf32>, vector<8x512xf32> -> vector<8x512xf32>
    %138 = arith.truncf %131 : vector<8x128xf32> to vector<8x128xbf16>
    %cst_25 = arith.constant dense<0.000000e+00> : vector<8x512xf32>
    %139 = tpu.matmul %138, %8, %cst_25 {dimension_numbers = #tpu.dot_dimension_numbers<[1], [0], [0], [1], [0, 0, 1, 1], [], []>} : vector<8x128xbf16>, vector<128x512xbf16>, vector<8x512xf32> -> vector<8x512xf32>
    %140 = arith.addf %137, %139 : vector<8x512xf32>
    %141 = vector.extract_strided_slice %140 {offsets = [0, 0], sizes = [8, 384], strides = [1, 1]} : vector<8x512xf32> to vector<8x384xf32>
    %142 = arith.negf %141 : vector<8x384xf32>
    %143 = math.exp %142 : vector<8x384xf32>
    %cst_26 = arith.constant 1.000000e+00 : f32
    %144 = vector.broadcast %cst_26 : f32 to vector<8x384xf32>
    %145 = arith.addf %144, %143 : vector<8x384xf32>
    %146 = arith.divf %144, %145 : vector<8x384xf32>
    %147 = vector.extract_strided_slice %146 {offsets = [0, 0], sizes = [8, 128], strides = [1, 1]} : vector<8x384xf32> to vector<8x128xf32>
    %148 = vector.extract_strided_slice %146 {offsets = [0, 128], sizes = [8, 128], strides = [1, 1]} : vector<8x384xf32> to vector<8x128xf32>
    %149 = vector.extract_strided_slice %146 {offsets = [0, 256], sizes = [8, 128], strides = [1, 1]} : vector<8x384xf32> to vector<8x128xf32>
    %150 = vector.extract_strided_slice %140 {offsets = [0, 384], sizes = [8, 128], strides = [1, 1]} : vector<8x512xf32> to vector<8x128xf32>
    %151 = math.tanh %150 : vector<8x128xf32>
    %152 = arith.mulf %148, %129 : vector<8x128xf32>
    %153 = arith.mulf %147, %151 : vector<8x128xf32>
    %154 = arith.addf %152, %153 : vector<8x128xf32>
    %155 = math.tanh %154 : vector<8x128xf32>
    %156 = arith.mulf %149, %155 : vector<8x128xf32>
    %157 = vector.extract_strided_slice %6 {offsets = [0, 6], sizes = [8, 1], strides = [1, 1]} : vector<8x8xi32> to vector<8x1xi32>
    %158 = vector.broadcast %157 : vector<8x1xi32> to vector<8x50xi32>
    %159 = arith.cmpi eq, %158, %7 : vector<8x50xi32>
    %160 = arith.extui %159 : vector<8x50xi1> to vector<8x50xi32>
    %161 = arith.sitofp %160 : vector<8x50xi32> to vector<8x50xf32>
    %cst_27 = arith.constant dense<0.000000e+00> : vector<8x512xf32>
    %162 = tpu.matmul %161, %5, %cst_27 {dimension_numbers = #tpu.dot_dimension_numbers<[1], [0], [0], [1], [0, 0, 1, 1], [], []>} : vector<8x50xf32>, vector<50x512xf32>, vector<8x512xf32> -> vector<8x512xf32>
    %163 = arith.truncf %156 : vector<8x128xf32> to vector<8x128xbf16>
    %cst_28 = arith.constant dense<0.000000e+00> : vector<8x512xf32>
    %164 = tpu.matmul %163, %8, %cst_28 {dimension_numbers = #tpu.dot_dimension_numbers<[1], [0], [0], [1], [0, 0, 1, 1], [], []>} : vector<8x128xbf16>, vector<128x512xbf16>, vector<8x512xf32> -> vector<8x512xf32>
    %165 = arith.addf %162, %164 : vector<8x512xf32>
    %166 = vector.extract_strided_slice %165 {offsets = [0, 0], sizes = [8, 384], strides = [1, 1]} : vector<8x512xf32> to vector<8x384xf32>
    %167 = arith.negf %166 : vector<8x384xf32>
    %168 = math.exp %167 : vector<8x384xf32>
    %cst_29 = arith.constant 1.000000e+00 : f32
    %169 = vector.broadcast %cst_29 : f32 to vector<8x384xf32>
    %170 = arith.addf %169, %168 : vector<8x384xf32>
    %171 = arith.divf %169, %170 : vector<8x384xf32>
    %172 = vector.extract_strided_slice %171 {offsets = [0, 0], sizes = [8, 128], strides = [1, 1]} : vector<8x384xf32> to vector<8x128xf32>
    %173 = vector.extract_strided_slice %171 {offsets = [0, 128], sizes = [8, 128], strides = [1, 1]} : vector<8x384xf32> to vector<8x128xf32>
    %174 = vector.extract_strided_slice %171 {offsets = [0, 256], sizes = [8, 128], strides = [1, 1]} : vector<8x384xf32> to vector<8x128xf32>
    %175 = vector.extract_strided_slice %165 {offsets = [0, 384], sizes = [8, 128], strides = [1, 1]} : vector<8x512xf32> to vector<8x128xf32>
    %176 = math.tanh %175 : vector<8x128xf32>
    %177 = arith.mulf %173, %154 : vector<8x128xf32>
    %178 = arith.mulf %172, %176 : vector<8x128xf32>
    %179 = arith.addf %177, %178 : vector<8x128xf32>
    %180 = math.tanh %179 : vector<8x128xf32>
    %181 = arith.mulf %174, %180 : vector<8x128xf32>
    %182 = vector.extract_strided_slice %6 {offsets = [0, 7], sizes = [8, 1], strides = [1, 1]} : vector<8x8xi32> to vector<8x1xi32>
    %183 = vector.broadcast %182 : vector<8x1xi32> to vector<8x50xi32>
    %184 = arith.cmpi eq, %183, %7 : vector<8x50xi32>
    %185 = arith.extui %184 : vector<8x50xi1> to vector<8x50xi32>
    %186 = arith.sitofp %185 : vector<8x50xi32> to vector<8x50xf32>
    %cst_30 = arith.constant dense<0.000000e+00> : vector<8x512xf32>
    %187 = tpu.matmul %186, %5, %cst_30 {dimension_numbers = #tpu.dot_dimension_numbers<[1], [0], [0], [1], [0, 0, 1, 1], [], []>} : vector<8x50xf32>, vector<50x512xf32>, vector<8x512xf32> -> vector<8x512xf32>
    %188 = arith.truncf %181 : vector<8x128xf32> to vector<8x128xbf16>
    %cst_31 = arith.constant dense<0.000000e+00> : vector<8x512xf32>
    %189 = tpu.matmul %188, %8, %cst_31 {dimension_numbers = #tpu.dot_dimension_numbers<[1], [0], [0], [1], [0, 0, 1, 1], [], []>} : vector<8x128xbf16>, vector<128x512xbf16>, vector<8x512xf32> -> vector<8x512xf32>
    %190 = arith.addf %187, %189 : vector<8x512xf32>
    %191 = vector.extract_strided_slice %190 {offsets = [0, 0], sizes = [8, 384], strides = [1, 1]} : vector<8x512xf32> to vector<8x384xf32>
    %192 = arith.negf %191 : vector<8x384xf32>
    %193 = math.exp %192 : vector<8x384xf32>
    %cst_32 = arith.constant 1.000000e+00 : f32
    %194 = vector.broadcast %cst_32 : f32 to vector<8x384xf32>
    %195 = arith.addf %194, %193 : vector<8x384xf32>
    %196 = arith.divf %194, %195 : vector<8x384xf32>
    %197 = vector.extract_strided_slice %196 {offsets = [0, 0], sizes = [8, 128], strides = [1, 1]} : vector<8x384xf32> to vector<8x128xf32>
    %198 = vector.extract_strided_slice %196 {offsets = [0, 128], sizes = [8, 128], strides = [1, 1]} : vector<8x384xf32> to vector<8x128xf32>
    %199 = vector.extract_strided_slice %196 {offsets = [0, 256], sizes = [8, 128], strides = [1, 1]} : vector<8x384xf32> to vector<8x128xf32>
    %200 = vector.extract_strided_slice %190 {offsets = [0, 384], sizes = [8, 128], strides = [1, 1]} : vector<8x512xf32> to vector<8x128xf32>
    %201 = math.tanh %200 : vector<8x128xf32>
    %202 = arith.mulf %198, %179 : vector<8x128xf32>
    %203 = arith.mulf %197, %201 : vector<8x128xf32>
    %204 = arith.addf %202, %203 : vector<8x128xf32>
    %205 = math.tanh %204 : vector<8x128xf32>
    %206 = arith.mulf %199, %205 : vector<8x128xf32>
    %c0_33 = arith.constant 0 : index
    %c0_34 = arith.constant 0 : index
    %207 = vector.load %arg5[%c0_33, %c0_34] : memref<1x128xf32, #tpu.memory_space<vmem>>, vector<1x128xf32>
    %208 = vector.broadcast %207 : vector<1x128xf32> to vector<8x128xf32>
    %209 = arith.mulf %206, %208 : vector<8x128xf32>
    %cst_35 = arith.constant dense<0.000000e+00> : vector<8xf32>
    %210 = vector.multi_reduction <add>, %209, %cst_35 [1] : vector<8x128xf32> to vector<8xf32>
    %211 = vector.shape_cast %210 : vector<8xf32> to vector<8x1xf32>
    %c0_36 = arith.constant 0 : index
    %212 = memref.load %arg6[%c0_36] : memref<1xf32, #tpu.memory_space<smem>>
    %213 = vector.broadcast %212 : f32 to vector<8x1xf32>
    %214 = arith.addf %211, %213 : vector<8x1xf32>
    %215 = arith.negf %214 : vector<8x1xf32>
    %216 = math.exp %215 : vector<8x1xf32>
    %cst_37 = arith.constant 1.000000e+00 : f32
    %217 = vector.broadcast %cst_37 : f32 to vector<8x1xf32>
    %218 = arith.addf %217, %216 : vector<8x1xf32>
    %219 = arith.divf %217, %218 : vector<8x1xf32>
    %c0_38 = arith.constant 0 : index
    %c0_39 = arith.constant 0 : index
    %220 = vector.load %arg7[%c0_38, %c0_39] : memref<8x1xf32, #tpu.memory_space<vmem>>, vector<8x1xf32>
    tpu.vector_store %arg7[%c0_38, %c0_39], %219 {strides = array<i32>} : memref<8x1xf32, #tpu.memory_space<vmem>>, vector<8x1xf32>,
    return
  }
}

</mosaic_0001>

<bundles_post_ra>
// kernel: tpu_custom_call.1
= control target key start
LH: loop header
LB: loop body
LE: loop exit
PB: predicated region body
PF: predicated region fallthrough
CT: control target
= control target key end

     0   :  { %13 = vsyncpa [#allocation4], 0  ;;  %s4131_s0 = inlined_call_operand.hbm [shape: s32[8,8], index: 0, kind: input, shape index: {}]   ;;  %s4132_s1 = inlined_call_operand.hbm [shape: f32[50,128], index: 1, kind: input, shape index: {}]   ;;  %s4133_s2 = inlined_call_operand.hbm [shape: f32[128,512], index: 2, kind: input, shape index: {}]   ;;  %s4134_s3 = inlined_call_operand.vmem [shape: f32[1,512], index: 3, kind: input, shape index: {}]   ;;  %s4135_s4 = inlined_call_operand.hbm [shape: bf16[128,512], index: 4, kind: input, shape index: {}]   ;;  %s4136_s5 = inlined_call_operand.vmem [shape: f32[1,128], index: 5, kind: input, shape index: {}]   ;;  %s4137_s6 = inlined_call_operand.<no memory space> [shape: f32[1], index: 6, kind: input, shape index: {}]   ;;  %s4138_s7 = inlined_call_operand.vmem [shape: f32[8,1], index: 7, kind: output, shape index: {}]  }
   0x1   :  { %14 = vsyncpa [#allocation6], 0 }
   0x2   :  { %15 = vsyncpa [#allocation9], 0  ;;  %s3311_s24 = smov [#allocation5]   ;;  %s3217_s28 = scalar_lea.hbm %s4132_s1, 896 }
   0x3   :  { %s31_s25 = sshll.u32 %s3311_s24, 4  ;;  %p3218_p0 = scmp.ne.s32.totalorder %s4132_s1, %s3217_s28  ;;  %s32_s25 = int_to_ptr.vmem [resolvable:$true] %s31_s25 }
   0x4   :  { %p3221_p1 = scmp.lt.u32.totalorder %s3217_s28, %s4132_s1 }
   0x6   :  { %p3223_p2 = pnand %p3221_p1, %p3218_p0 }
   0x8   :  { %3226 = shalt.err (!%p3223_p2)
}
   0x9   :  { %s3227_s10 = scalar_lea.vmem %s32_s25, 896  ;;  %p3232_p4 = scmp.lt.s32.totalorder %s32_s25, %s32_s25 }
   0xa   :  { %p3228_p3 = scmp.ne.s32.totalorder %s32_s25, %s3227_s10  ;;  %p3233_p5 = scmp.lt.s32.totalorder %s3227_s10, %s3227_s10 }
   0xc   :  { %p3234_p6 = por %p3233_p5, %p3232_p4 }
   0xe   :  { %p3235_p7 = pnand %p3234_p6, %p3228_p3 }
  0x10   :  { %3238 = shalt.err (!%p3235_p7)
}
  0x11   :  { %s3312_s11 = smov 128   ;;  %s3313_s12 = smov 8  }
  0x12   :  { %37 = dma.hbm_to_vmem [thread:$0]  %s4132_s1, 896, %s32_s25, [#allocation6], %s3312_s11, %s3312_s11, %s3313_s12  }
  0x13   :  { %s3314_s15 = smov [#allocation3]   ;;  %s3315_s17 = smov [#allocation7]  }
  0x14   :  { %s22_s16 = sshll.u32 %s3314_s15, 4  ;;  %s43_s18 = sshll.u32 %s3315_s17, 4  ;;  %s23_s16 = int_to_ptr.vmem [resolvable:$true] %s22_s16  ;;  %s44_s18 = int_to_ptr.vmem [resolvable:$true] %s43_s18 }
  0x15   :  { %s3239_s21 = scalar_lea.hbm %s4131_s0, 128 }
  0x16   :  { %p3240_p8 = scmp.ne.s32.totalorder %s4131_s0, %s3239_s21  ;;  %p3243_p9 = scmp.lt.u32.totalorder %s3239_s21, %s4131_s0 }
  0x18   :  { %p3245_p10 = pnand %p3243_p9, %p3240_p8 }
  0x1a   :  { %3248 = shalt.err (!%p3245_p10)
}
  0x1b   :  { %s3249_s1 = scalar_lea.vmem %s23_s16, 128  ;;  %p3254_p12 = scmp.lt.s32.totalorder %s23_s16, %s23_s16 }
  0x1c   :  { %p3250_p11 = scmp.ne.s32.totalorder %s23_s16, %s3249_s1  ;;  %p3255_p13 = scmp.lt.s32.totalorder %s3249_s1, %s3249_s1 }
  0x1e   :  { %p3256_p0 = por %p3255_p13, %p3254_p12 }
  0x20   :  { %p3257_p1 = pnand %p3256_p0, %p3250_p11 }
  0x22   :  { %3260 = shalt.err (!%p3257_p1)
}
  0x23   :  { %25 = dma.hbm_to_vmem [thread:$0]  %s4131_s0, 128, %s23_s16, [#allocation4]  }
  0x24   :  { %s3261_s30 = scalar_lea.hbm %s4133_s2, 8192 }
  0x25   :  { %p3262_p2 = scmp.ne.s32.totalorder %s4133_s2, %s3261_s30  ;;  %p3265_p3 = scmp.lt.u32.totalorder %s3261_s30, %s4133_s2 }
  0x27   :  { %p3267_p4 = pnand %p3265_p3, %p3262_p2 }
  0x29   :  { %3270 = shalt.err (!%p3267_p4)
}
  0x2a   :  { %s3271_s12 = scalar_lea.vmem %s44_s18, 8192  ;;  %p3276_p6 = scmp.lt.s32.totalorder %s44_s18, %s44_s18 }
  0x2b   :  { %p3272_p5 = scmp.ne.s32.totalorder %s44_s18, %s3271_s12  ;;  %p3277_p7 = scmp.lt.s32.totalorder %s3271_s12, %s3271_s12 }
  0x2d   :  { %p3278_p8 = por %p3277_p7, %p3276_p6 }
  0x2f   :  { %p3279_p9 = pnand %p3278_p8, %p3272_p5 }
  0x31   :  { %3282 = shalt.err (!%p3279_p9)
}
  0x32   :  { %s3316_s0 = smov 512   ;;  %s3317_s13 = smov 32  }
  0x33   :  { %49 = dma.hbm_to_vmem [thread:$0]  %s4133_s2, 8192, %s44_s18, [#allocation6], %s3316_s0, %s3316_s0, %s3317_s13  }
  0x34   :  { %s3318_s16 = smov [#allocation8]   ;;  %s3283_s21 = scalar_lea.hbm %s4135_s4, 4096 }
  0x35   :  { %s57_s17 = sshll.u32 %s3318_s16, 4  ;;  %p3284_p10 = scmp.ne.s32.totalorder %s4135_s4, %s3283_s21  ;;  %s58_s17 = int_to_ptr.vmem [resolvable:$true] %s57_s17 }
  0x36   :  { %p3287_p11 = scmp.lt.u32.totalorder %s3283_s21, %s4135_s4 }
  0x38   :  { %p3289_p12 = pnand %p3287_p11, %p3284_p10 }
  0x3a   :  { %3292 = shalt.err (!%p3289_p12)
}
  0x3b   :  { %s3293_s1 = scalar_lea.vmem %s58_s17, 4096  ;;  %p3298_p0 = scmp.lt.s32.totalorder %s58_s17, %s58_s17 }
  0x3c   :  { %p3294_p13 = scmp.ne.s32.totalorder %s58_s17, %s3293_s1  ;;  %p3299_p1 = scmp.lt.s32.totalorder %s3293_s1, %s3293_s1 }
  0x3e   :  { %p3300_p2 = por %p3299_p1, %p3298_p0 }
  0x40   :  { %p3301_p3 = pnand %p3300_p2, %p3294_p13 }
  0x42   :  { %3304 = shalt.err (!%p3301_p3)
}
  0x43   :  { %s3319_s2 = smov 256   ;;  %s3320_s18 = smov 16  }
  0x44   :  { %63 = dma.hbm_to_vmem [thread:$0]  %s4135_s4, 4096, %s58_s17, [#allocation9], %s3319_s2, %s3319_s2, %s3320_s18  }
  0x45   :  { %3305 = dma.done.wait [#allocation4], 128  }
  0x46   :  { %3306 = vsyncadd [#allocation4], 4294967168 }
  0x47   :  { %3307 = dma.done.wait [#allocation6], 9088  }
  0x48   :  { %3308 = vsyncadd [#allocation6], 4294958208 }
  0x49   :  { %3309 = dma.done.wait [#allocation9], 4096  }
  0x4a   :  { %3310 = vsyncadd [#allocation9], 4294963200  ;;  %v4141_v0 = vmov 0.0   ;;  %v4139_v1 = vmov 0   ;;  %v89_v2 = vld [vmem:[#allocation7 + $0x8] sm:$0xff]  ;;  %v91_v4 = vld [vmem:[#allocation7 + $0x18] sm:$0xff] }
  0x4b   :  { %238 = vmatprep.mubr.f32.mxu0 %v4141_v0  ;;  %345 = vmatprep.mubr.f32.mxu1 %v4141_v0  ;;  %v93_v3 = vld [vmem:[#allocation7 + $0x28] sm:$0xff]  ;;  %v95_v6 = vld [vmem:[#allocation7 + $0x38] sm:$0xff]  ;;  %v88_v7 = vld [vmem:[#allocation7] sm:$0xff]  ;;  %vm433_vm0 = vcmask 1041408   ;;  %vm429_vm2 = vcmask 408576   ;;  %vm2597_vm10 = vcmask 7168  }
  0x4c   :  { %2995 = vset.pattern.permute.xlu0 %v4139_v1  ;;  %v2720_v5 = vpack.c.bf16 %v93_v3, %v89_v2  ;;  %v92_v8 = vld [vmem:[#allocation7 + $0x20] sm:$0xff]  ;;  %v2752_v9 = vpack.c.bf16 %v95_v6, %v91_v4  ;;  %v90_v11 = vld [vmem:[#allocation7 + $0x10] sm:$0xff]  ;;  %v97_v13 = vld [vmem:[#allocation7 + $0x48] sm:$0xff] }
  0x4d   :  { %v2722_v10 = vpack.c.bf16 %v92_v8, %v88_v7  ;;  %v94_v12 = vld [vmem:[#allocation7 + $0x30] sm:$0xff]  ;;  %v101_v15 = vld [vmem:[#allocation7 + $0x68] sm:$0xff]  ;;  %v99_v16 = vld [vmem:[#allocation7 + $0x58] sm:$0xff] }
  0x4e   :  { %2721 = vmatprep.subr.bf16.mxu0 %v2720_v5  ;;  %v2754_v14 = vpack.c.bf16 %v94_v12, %v90_v11  ;;  %v103_v17 = vld [vmem:[#allocation7 + $0x78] sm:$0xff]  ;;  %2753 = vmatprep.subr.bf16.mxu1 %v2752_v9  ;;  %v2724_v18 = vpack.c.bf16 %v101_v15, %v97_v13  ;;  %v96_v20 = vld [vmem:[#allocation7 + $0x40] sm:$0xff]  ;;  %v98_v22 = vld [vmem:[#allocation7 + $0x50] sm:$0xff] }
  0x4f   :  { %2723 = vmatpush1.bf16.msra.mxu0 %v2722_v10  ;;  %v2756_v19 = vpack.c.bf16 %v103_v17, %v99_v16  ;;  %v100_v21 = vld [vmem:[#allocation7 + $0x60] sm:$0xff]  ;;  %v102_v24 = vld [vmem:[#allocation7 + $0x70] sm:$0xff]  ;;  %v105_v25 = vld [vmem:[#allocation7 + $0x88] sm:$0xff] }
  0x50   :  { %2755 = vmatpush1.bf16.msra.mxu1 %v2754_v14  ;;  %v2726_v23 = vpack.c.bf16 %v100_v21, %v96_v20  ;;  %v109_v26 = vld [vmem:[#allocation7 + $0xa8] sm:$0xff]  ;;  %2725 = vmatprep.subr.bf16.mxu0 %v2724_v18  ;;  %v2758_v27 = vpack.c.bf16 %v102_v24, %v98_v22  ;;  %v107_v29 = vld [vmem:[#allocation7 + $0x98] sm:$0xff]  ;;  %v104_v31 = vld [vmem:[#allocation7 + $0x80] sm:$0xff] }
  0x51   :  { %2757 = vmatprep.subr.bf16.mxu1 %v2756_v19  ;;  %v2728_v28 = vpack.c.bf16 %v109_v26, %v105_v25  ;;  %v111_v30 = vld [vmem:[#allocation7 + $0xb8] sm:$0xff]  ;;  %v108_v33 = vld [vmem:[#allocation7 + $0xa0] sm:$0xff]  ;;  %v106_v34 = vld [vmem:[#allocation7 + $0x90] sm:$0xff] }
  0x52   :  { %v2760_v32 = vpack.c.bf16 %v111_v30, %v107_v29  ;;  %v110_v35 = vld [vmem:[#allocation7 + $0xb0] sm:$0xff]  ;;  %v2730_v36 = vpack.c.bf16 %v108_v33, %v104_v31  ;;  %v113_v37 = vld [vmem:[#allocation7 + $0xc8] sm:$0xff]  ;;  %v115_v39 = vld [vmem:[#allocation7 + $0xd8] sm:$0xff] }
  0x53   :  { %2727 = vmatpush1.bf16.msra.mxu0 %v2726_v23  ;;  %v117_v38 = vld [vmem:[#allocation7 + $0xe8] sm:$0xff]  ;;  %v2762_v40 = vpack.c.bf16 %v110_v35, %v106_v34  ;;  %v119_v42 = vld [vmem:[#allocation7 + $0xf8] sm:$0xff]  ;;  %v112_v43 = vld [vmem:[#allocation7 + $0xc0] sm:$0xff] }
  0x54   :  { %2759 = vmatpush1.bf16.msra.mxu1 %v2758_v27  ;;  %2729 = vmatprep.subr.bf16.mxu0 %v2728_v28  ;;  %v2732_v41 = vpack.c.bf16 %v117_v38, %v113_v37  ;;  %v116_v44 = vld [vmem:[#allocation7 + $0xe0] sm:$0xff]  ;;  %v2764_v45 = vpack.c.bf16 %v119_v42, %v115_v39  ;;  %v114_v46 = vld [vmem:[#allocation7 + $0xd0] sm:$0xff]  ;;  %v121_v48 = vld [vmem:[#allocation7 + $0x108] sm:$0xff] }
  0x55   :  { %2761 = vmatprep.subr.bf16.mxu1 %v2760_v32  ;;  %v118_v47 = vld [vmem:[#allocation7 + $0xf0] sm:$0xff]  ;;  %v125_v49 = vld [vmem:[#allocation7 + $0x128] sm:$0xff]  ;;  %v123_v50 = vld [vmem:[#allocation7 + $0x118] sm:$0xff]  ;;  %v2734_v52 = vpack.c.bf16 %v116_v44, %v112_v43  ;;  %v3323_v44 = vmov 1  }
  0x56   :  { %v127_v51 = vld [vmem:[#allocation7 + $0x138] sm:$0xff]  ;;  %v2766_v53 = vpack.c.bf16 %v118_v47, %v114_v46  ;;  %v2736_v54 = vpack.c.bf16 %v125_v49, %v121_v48  ;;  %v120_v55 = vld [vmem:[#allocation7 + $0x100] sm:$0xff]  ;;  %v122_v57 = vld [vmem:[#allocation7 + $0x110] sm:$0xff] }
  0x57   :  { %2731 = vmatpush1.bf16.msra.mxu0 %v2730_v36  ;;  %v124_v56 = vld [vmem:[#allocation7 + $0x120] sm:$0xff]  ;;  %v2768_v58 = vpack.c.bf16 %v127_v51, %v123_v50  ;;  %v126_v59 = vld [vmem:[#allocation7 + $0x130] sm:$0xff]  ;;  %v129_v60 = vld [vmem:[#allocation7 + $0x148] sm:$0xff] }
  0x58   :  { %2763 = vmatpush1.bf16.msra.mxu1 %v2762_v40  ;;  %2733 = vmatprep.subr.bf16.mxu0 %v2732_v41  ;;  %v133_v61 = vld [vmem:[#allocation7 + $0x168] sm:$0xff]  ;;  %v131_v62 = vld [vmem:[#allocation7 + $0x158] sm:$0xff]  ;;  %v2738_v2 = vpack.c.bf16 %v124_v56, %v120_v55  ;;  %v2770_v3 = vpack.c.bf16 %v126_v59, %v122_v57  ;;  %v128_v5 = vld [vmem:[#allocation7 + $0x140] sm:$0xff] }
  0x59   :  { %2765 = vmatprep.subr.bf16.mxu1 %v2764_v45  ;;  %v135_v63 = vld [vmem:[#allocation7 + $0x178] sm:$0xff]  ;;  %v2740_v4 = vpack.c.bf16 %v133_v61, %v129_v60  ;;  %v132_v6 = vld [vmem:[#allocation7 + $0x160] sm:$0xff]  ;;  %v130_v7 = vld [vmem:[#allocation7 + $0x150] sm:$0xff]  ;;  %v154_v45 = vlaneseq }
  0x5a   :  { %v2772_v8 = vpack.c.bf16 %v135_v63, %v131_v62  ;;  %v134_v9 = vld [vmem:[#allocation7 + $0x170] sm:$0xff]  ;;  %v137_v10 = vld [vmem:[#allocation7 + $0x188] sm:$0xff]  ;;  %v139_v12 = vld [vmem:[#allocation7 + $0x198] sm:$0xff]  ;;  %v2742_v14 = vpack.c.bf16 %v132_v6, %v128_v5 }
  0x5b   :  { %2735 = vmatpush1.bf16.msra.mxu0 %v2734_v52  ;;  %v141_v11 = vld [vmem:[#allocation7 + $0x1a8] sm:$0xff]  ;;  %v143_v13 = vld [vmem:[#allocation7 + $0x1b8] sm:$0xff]  ;;  %v136_v15 = vld [vmem:[#allocation7 + $0x180] sm:$0xff]  ;;  %v2774_v17 = vpack.c.bf16 %v134_v9, %v130_v7  ;;  %v155_v46 = vshrl.u32 %v154_v45, 7 }
  0x5c   :  { %2767 = vmatpush1.bf16.msra.mxu1 %v2766_v53  ;;  %2737 = vmatprep.subr.bf16.mxu0 %v2736_v54  ;;  %v140_v16 = vld [vmem:[#allocation7 + $0x1a0] sm:$0xff]  ;;  %v2744_v18 = vpack.c.bf16 %v141_v11, %v137_v10  ;;  %v138_v19 = vld [vmem:[#allocation7 + $0x190] sm:$0xff]  ;;  %v145_v21 = vld [vmem:[#allocation7 + $0x1c8] sm:$0xff]  ;;  %v2776_v22 = vpack.c.bf16 %v143_v13, %v139_v12 }
  0x5d   :  { %2769 = vmatprep.subr.bf16.mxu1 %v2768_v58  ;;  %v142_v20 = vld [vmem:[#allocation7 + $0x1b0] sm:$0xff]  ;;  %v149_v23 = vld [vmem:[#allocation7 + $0x1e8] sm:$0xff]  ;;  %v147_v24 = vld [vmem:[#allocation7 + $0x1d8] sm:$0xff]  ;;  %v2746_v29 = vpack.c.bf16 %v140_v16, %v136_v15  ;;  %v164_v47 = vsub.s32 2, %v155_v46  ;;  %v156_v48 = vsub.s32 0, %v155_v46  ;;  %v168_v49 = vsub.s32 3, %v155_v46 }
  0x5e   :  { %v151_v25 = vld [vmem:[#allocation7 + $0x1f8] sm:$0xff]  ;;  %v144_v26 = vld [vmem:[#allocation7 + $0x1c0] sm:$0xff]  ;;  %v146_v30 = vld [vmem:[#allocation7 + $0x1d0] sm:$0xff]  ;;  %v2778_v32 = vpack.c.bf16 %v142_v20, %v138_v19  ;;  %v2748_v33 = vpack.c.bf16 %v149_v23, %v145_v21  ;;  %v160_v51 = vsub.s32 1, %v155_v46 }
  0x5f   :  { %2739 = vmatpush1.bf16.msra.mxu0 %v2738_v2  ;;  %v148_v27 = vld [vmem:[#allocation7 + $0x1e0] sm:$0xff]  ;;  %v150_v31 = vld [vmem:[#allocation7 + $0x1f0] sm:$0xff]  ;;  %v2780_v34 = vpack.c.bf16 %v151_v25, %v147_v24  ;;  %v81_v37 = vld [vmem:[#allocation5] sm:$0xff] }
  0x60   :  { %2771 = vmatpush1.bf16.msra.mxu1 %v2770_v3  ;;  %2741 = vmatprep.subr.bf16.mxu0 %v2740_v4  ;;  %v3421_v28 = vld [vmem:[#allocation3] sm:$0xff]  ;;  %v2750_v35 = vpack.c.bf16 %v148_v27, %v144_v26  ;;  %v2782_v36 = vpack.c.bf16 %v150_v31, %v146_v30  ;;  %v82_v38 = vld [vmem:[#allocation5 + $0x8] sm:$0xff]  ;;  %v83_v39 = vld [vmem:[#allocation5 + $0x10] sm:$0xff] }
  0x61   :  { %2773 = vmatprep.subr.bf16.mxu1 %v2772_v8  ;;  %4174 = vst [vmem:[#allocation13_spill] sm:$0xff] %v3421_v28  ;;  %424 = vperm.xlu0 %2995, %v3421_v28   ;;  %v84_v40 = vld [vmem:[#allocation5 + $0x18] sm:$0xff]  ;;  %v85_v41 = vld [vmem:[#allocation5 + $0x20] sm:$0xff]  ;;  %v86_v42 = vld [vmem:[#allocation5 + $0x28] sm:$0xff] }
  0x62   :  { %v87_v43 = vld [vmem:[#allocation5 + $0x30] sm:$0x3]  ;;  %v152_v50 = vld [vmem:[%s4134_s3] sm:$0xf] }
  0x63   :  { %2743 = vmatpush1.bf16.msra.mxu0 %v2742_v14  ;;  %v3443_v53 = vrot.slane %v152_v50, %v164_v47  ;;  %v3445_v54 = vrot.slane %v152_v50, %v156_v48  ;;  %v3447_v57 = vrot.slane %v152_v50, %v168_v49  ;;  %v3449_v58 = vrot.slane %v152_v50, %v160_v51 }
  0x64   :  { %2775 = vmatpush1.bf16.msra.mxu1 %v2774_v17  ;;  %2745 = vmatprep.subr.bf16.mxu0 %v2744_v18  ;;  %v3499_v51 = vand.u32 127, %v154_v45 }
  0x65   :  { %2777 = vmatprep.subr.bf16.mxu1 %v2776_v22  ;;  %2996 = vset.pattern.permute.xlu0 %v3323_v44 }
  0x66   :  { %613 = vperm.xlu0 %2996, %v3421_v28  }
  0x67   :  { %2747 = vmatpush1.bf16.msra.mxu0 %v2746_v29 }
  0x68   :  { %2779 = vmatpush1.bf16.msra.mxu1 %v2778_v32  ;;  %2749 = vmatprep.subr.bf16.mxu0 %v2748_v33 }
  0x69   :  { %2781 = vmatprep.subr.bf16.mxu1 %v2780_v34 }
  0x6b   :  { %2751 = vmatpush1.bf16.msra.mxu0 %v2750_v35 }
  0x6c   :  { %2783 = vmatpush1.bf16.msra.mxu1 %v2782_v36 }
  0x6e   :  { %239 = vmatmul.mubr.f32.vlgmr.msra.gmra.mrb[0].mxu0 %v81_v37 }
  0x6f   :  { %346 = vmatmul.mubr.f32.vlgmr.msra.gmra.mrb[0].mxu1 %v81_v37  ;;  %244 = vmatprep.mubr.f32.mxu0 %v4141_v0 }
  0x70   :  { %351 = vmatprep.mubr.f32.mxu1 %v4141_v0 }
  0x72   :  { %245 = vmatmul.mubr.f32.gmra.mrb[2].mxu0 %v82_v38 }
  0x73   :  { %352 = vmatmul.mubr.f32.gmra.mrb[2].mxu1 %v82_v38  ;;  %250 = vmatprep.mubr.f32.mxu0 %v4141_v0 }
  0x74   :  { %357 = vmatprep.mubr.f32.mxu1 %v4141_v0 }
  0x76   :  { %251 = vmatmul.mubr.f32.gmra.mrb[4].mxu0 %v83_v39 }
  0x77   :  { %358 = vmatmul.mubr.f32.gmra.mrb[4].mxu1 %v83_v39  ;;  %256 = vmatprep.mubr.f32.mxu0 %v4141_v0 }
  0x78   :  { %363 = vmatprep.mubr.f32.mxu1 %v4141_v0 }
  0x7a   :  { %257 = vmatmul.mubr.f32.gmra.mrb[6].mxu0 %v84_v40 }
  0x7b   :  { %364 = vmatmul.mubr.f32.gmra.mrb[6].mxu1 %v84_v40  ;;  %262 = vmatprep.mubr.f32.mxu0 %v4141_v0 }
  0x7c   :  { %369 = vmatprep.mubr.f32.mxu1 %v4141_v0 }
  0x7e   :  { %263 = vmatmul.mubr.f32.gmra.mrb[8].mxu0 %v85_v41 }
  0x7f   :  { %370 = vmatmul.mubr.f32.gmra.mrb[8].mxu1 %v85_v41  ;;  %268 = vmatprep.mubr.f32.mxu0 %v4141_v0 }
  0x80   :  { %375 = vmatprep.mubr.f32.mxu1 %v4141_v0 }
  0x82   :  { %269 = vmatmul.mubr.f32.gmra.mrb[10].mxu0 %v86_v42 }
  0x83   :  { %376 = vmatmul.mubr.f32.gmra.mrb[10].mxu1 %v86_v42  ;;  %274 = vmatprep.mubr.f32.mxu0 %v4141_v0 }
  0x84   :  { %381 = vmatprep.mubr.f32.mxu1 %v4141_v0 }
  0x86   :  { %275 = vmatmul.mubr.f32.gmra.mrb[12].mxu0 %v87_v43 }
  0x87   :  { %382 = vmatmul.mubr.f32.gmra.mrb[12].mxu1 %v87_v43  ;;  %510 = vmatprep.mubr.f32.mxu0 %v4141_v0 }
  0x88   :  { %581 = vmatprep.mubr.f32.mxu1 %v4141_v0 }
 0x141   :  { %v240_v52 = vpop.f32.mrb[0].mxu0 }
 0x142   :  { %v242_v55 = vpop.f32.mrb[1].mxu0  ;;  %v347_v56 = vpop.f32.mrb[0].mxu1  ;;  %v241_v62 = vadd.f32 %v240_v52, %v3445_v54 }
 0x143   :  { %v349_v59 = vpop.f32.mrb[1].mxu1  ;;  %v348_v61 = vadd.f32 %v347_v56, %v3443_v53  ;;  %v243_v5 = vadd.f32 %v242_v55, %v3449_v58  ;;  %v425_v56 = vpop.permute.xlu0 %424 }
 0x144   :  { %v350_v3 = vadd.f32 %v349_v59, %v3447_v57  ;;  %vm426_vm1 = vcmp.eq.s32.totalorder %v425_v56, %v3499_v51 }
 0x145   :  { %v246_v60 = vpop.f32.mrb[2].mxu0 }
 0x146   :  { %v247_v63 = vadd.f32 %v246_v60, %v3445_v54  ;;  %v248_v2 = vpop.f32.mrb[3].mxu0  ;;  %v353_v4 = vpop.f32.mrb[2].mxu1 }
 0x147   :  { %v249_v6 = vadd.f32 %v248_v2, %v3449_v58  ;;  %v354_v7 = vadd.f32 %v353_v4, %v3443_v53  ;;  %v355_v8 = vpop.f32.mrb[3].mxu1 }
 0x148   :  { %v3458_v9 = vpack.c.bf16 %v247_v63, %v241_v62  ;;  %v356_v10 = vadd.f32 %v355_v8, %v3447_v57  ;;  %v3540_v8 = vld [vmem:[#allocation8 + $0x8] ss:$16 sps:$4 sm:$0xff]  }
 0x149   :  { %v3461_v11 = vpack.c.bf16 %v249_v6, %v243_v5  ;;  %v252_v12 = vpop.f32.mrb[4].mxu0  ;;  %v3463_v13 = vpack.c.bf16 %v354_v7, %v348_v61  ;;  %v2606_v6 = vsel %vm426_vm1, 1.0, %v4141_v0  ;;  %v3534_v7 = vld [vmem:[#allocation8 + $0xc] ss:$16 sps:$4 sm:$0xff]  }
 0x14a   :  { %v254_v14 = vpop.f32.mrb[5].mxu0  ;;  %v3465_v15 = vpack.c.bf16 %v356_v10, %v350_v3  ;;  %v359_v16 = vpop.f32.mrb[4].mxu1  ;;  %v253_v20 = vadd.f32 %v252_v12, %v3445_v54  ;;  %v3542_v10 = vld [vmem:[#allocation8 + $0x24] ss:$16 sps:$4 sm:$0xff]   ;;  %v3553_v12 = vld [vmem:[#allocation8 + $0x20] ss:$16 sps:$4 sm:$0xff]  }
 0x14b   :  { %4175 = vst [vmem:[#allocation14_spill] sm:$0xff] %v3461_v11  ;;  %2785 = vmatprep.subr.bf16.mxu0 %v3461_v11  ;;  %v361_v17 = vpop.f32.mrb[5].mxu1  ;;  %v360_v19 = vadd.f32 %v359_v16, %v3443_v53  ;;  %v255_v25 = vadd.f32 %v254_v14, %v3449_v58  ;;  %v3557_v14 = vld [vmem:[#allocation8 + $0x28] ss:$16 sps:$4 sm:$0xff]   ;;  %v3559_v16 = vld [vmem:[#allocation8 + $0x44] ss:$16 sps:$4 sm:$0xff]  }
 0x14c   :  { %4176 = vst [vmem:[#allocation15_spill] sm:$0xff] %v3465_v15  ;;  %2787 = vmatpush1.bf16.msra.mxu0 %v3458_v9  ;;  %2797 = vmatprep.subr.bf16.mxu1 %v3465_v15  ;;  %v362_v23 = vadd.f32 %v361_v17, %v3447_v57  ;;  %v3562_v17 = vld [vmem:[#allocation8 + $0x4c] ss:$16 sps:$4 sm:$0xff]  }
 0x14d   :  { %v258_v18 = vpop.f32.mrb[6].mxu0  ;;  %2799 = vmatpush1.bf16.msra.mxu1 %v3463_v13 }
 0x14e   :  { %v259_v21 = vadd.f32 %v258_v18, %v3445_v54  ;;  %v260_v22 = vpop.f32.mrb[7].mxu0  ;;  %v365_v24 = vpop.f32.mrb[6].mxu1  ;;  %v3567_v18 = vld [vmem:[#allocation8 + $0x40] ss:$16 sps:$4 sm:$0xff]  }
 0x14f   :  { %v261_v26 = vadd.f32 %v260_v22, %v3449_v58  ;;  %v366_v27 = vadd.f32 %v365_v24, %v3443_v53  ;;  %v367_v29 = vpop.f32.mrb[7].mxu1  ;;  %v3579_v22 = vld [vmem:[#allocation8 + $0x60] ss:$16 sps:$4 sm:$0xff]   ;;  %v3585_v24 = vld [vmem:[#allocation8 + $0x84] ss:$16 sps:$4 sm:$0xff]  }
 0x150   :  { %v3478_v30 = vpack.c.bf16 %v259_v21, %v253_v20  ;;  %v368_v31 = vadd.f32 %v367_v29, %v3447_v57  ;;  %v3573_v20 = vld [vmem:[#allocation8 + $0x64] ss:$16 sps:$4 sm:$0xff]   ;;  %v3576_v21 = vld [vmem:[#allocation8 + $0x6c] ss:$16 sps:$4 sm:$0xff]  }
 0x151   :  { %v3481_v32 = vpack.c.bf16 %v261_v26, %v255_v25  ;;  %v264_v33 = vpop.f32.mrb[8].mxu0  ;;  %v3483_v34 = vpack.c.bf16 %v366_v27, %v360_v19  ;;  %v3571_v19 = vld [vmem:[#allocation8 + $0x48] ss:$16 sps:$4 sm:$0xff]   ;;  %v3588_v25 = vld [vmem:[#allocation8 + $0x8c] ss:$16 sps:$4 sm:$0xff]  }
 0x152   :  { %v266_v35 = vpop.f32.mrb[9].mxu0  ;;  %v3485_v36 = vpack.c.bf16 %v368_v31, %v362_v23  ;;  %v371_v37 = vpop.f32.mrb[8].mxu1  ;;  %v265_v41 = vadd.f32 %v264_v33, %v3445_v54  ;;  %v3583_v23 = vld [vmem:[#allocation8 + $0x68] ss:$16 sps:$4 sm:$0xff]   ;;  %v3591_v26 = vld [vmem:[#allocation8 + $0x80] ss:$16 sps:$4 sm:$0xff]  }
 0x153   :  { %2789 = vmatprep.subr.bf16.mxu0 %v3481_v32  ;;  %v373_v38 = vpop.f32.mrb[9].mxu1  ;;  %v372_v39 = vadd.f32 %v371_v37, %v3443_v53  ;;  %v267_v47 = vadd.f32 %v266_v35, %v3449_v58  ;;  %v3595_v27 = vld [vmem:[#allocation8 + $0x88] ss:$16 sps:$4 sm:$0xff]   ;;  %v3597_v29 = vld [vmem:[#allocation8 + $0xa4] ss:$16 sps:$4 sm:$0xff]  }
 0x154   :  { %2791 = vmatpush1.bf16.msra.mxu0 %v3478_v30  ;;  %2801 = vmatprep.subr.bf16.mxu1 %v3485_v36  ;;  %v374_v42 = vadd.f32 %v373_v38, %v3447_v57  ;;  %v3600_v31 = vld [vmem:[#allocation8 + $0xac] ss:$16 sps:$4 sm:$0xff]   ;;  %v3603_v33 = vld [vmem:[#allocation8 + $0xa0] ss:$16 sps:$4 sm:$0xff]   ;;  %v3607_v35 = vld [vmem:[#allocation8 + $0xa8] ss:$16 sps:$4 sm:$0xff]  }
 0x155   :  { %v270_v40 = vpop.f32.mrb[10].mxu0  ;;  %2803 = vmatpush1.bf16.msra.mxu1 %v3483_v34  ;;  %v3609_v37 = vld [vmem:[#allocation8 + $0xc4] ss:$16 sps:$4 sm:$0xff]   ;;  %v3612_v38 = vld [vmem:[#allocation8 + $0xcc] ss:$16 sps:$4 sm:$0xff]  }
 0x156   :  { %v271_v43 = vadd.f32 %v270_v40, %v3445_v54  ;;  %v377_v44 = vpop.f32.mrb[10].mxu1  ;;  %v272_v46 = vpop.f32.mrb[11].mxu0  ;;  %4177 = vst [vmem:[#allocation16_spill] sm:$0xff] %v3612_v38  ;;  %v3619_v40 = vld [vmem:[#allocation8 + $0xc8] ss:$16 sps:$4 sm:$0xff]  }
 0x157   :  { %v378_v48 = vadd.f32 %v377_v44, %v3443_v53  ;;  %v273_v49 = vadd.f32 %v272_v46, %v3449_v58  ;;  %v379_v50 = vpop.f32.mrb[11].mxu1  ;;  %4179 = vst [vmem:[#allocation18_spill] sm:$0xff] %v3619_v40  ;;  %v3631_v44 = vld [vmem:[#allocation8 + $0xe8] ss:$16 sps:$4 sm:$0xff]   ;;  %v3324_v46 = vmov 2  }
 0x158   :  { %v3501_v52 = vpack.c.bf16 %v271_v43, %v265_v41  ;;  %v380_v55 = vadd.f32 %v379_v50, %v3447_v57  ;;  %v3621_v41 = vld [vmem:[#allocation8 + $0xe4] ss:$16 sps:$4 sm:$0xff]   ;;  %v3627_v43 = vld [vmem:[#allocation8 + $0xe0] ss:$16 sps:$4 sm:$0xff]   ;;  %4183 = vst [vmem:[#allocation22_spill] sm:$0xff] %v3631_v44  ;;  %2997 = vset.pattern.permute.xlu1 %v3324_v46 }
 0x159   :  { %v3504_v59 = vpack.c.bf16 %v378_v48, %v372_v39  ;;  %v3506_v60 = vpack.c.bf16 %v273_v49, %v267_v47  ;;  %v276_v61 = vpop.f32.mrb[12].mxu0  ;;  %v3615_v39 = vld [vmem:[#allocation8 + $0xc0] ss:$16 sps:$4 sm:$0xff]   ;;  %4180 = vst [vmem:[#allocation19_spill] sm:$0xff] %v3621_v41  ;;  %4182 = vst [vmem:[#allocation21_spill] sm:$0xff] %v3627_v43  ;;  %1031 = vperm.xlu1 %2997, %v3421_v28  }
 0x15a   :  { %v3508_v62 = vpack.c.bf16 %v380_v55, %v374_v42  ;;  %v383_v63 = vpop.f32.mrb[12].mxu1  ;;  %v278_v2 = vpop.f32.mrb[13].mxu0  ;;  %4178 = vst [vmem:[#allocation17_spill] sm:$0xff] %v3615_v39  ;;  %v3624_v42 = vld [vmem:[#allocation8 + $0xec] ss:$16 sps:$4 sm:$0xff]  }
 0x15b   :  { %2793 = vmatprep.subr.bf16.mxu0 %v3506_v60  ;;  %v3512_v45 = vadd.f32 %v278_v2, %v3449_v58  ;;  %v385_v3 = vpop.f32.mrb[13].mxu1  ;;  %v3521_v5 = vadd.f32 %v383_v63, %v3443_v53  ;;  %v3527_v58 = vadd.f32 %v276_v61, %v3445_v54  ;;  %v3536_v53 = vld [vmem:[#allocation8] ss:$16 sps:$4 sm:$0xff]   ;;  %v3547_v54 = vld [vmem:[#allocation8 + $0x2c] ss:$16 sps:$4 sm:$0xff]   ;;  %4181 = vst [vmem:[#allocation20_spill] sm:$0xff] %v3624_v42 }
 0x15c   :  { %2805 = vmatprep.subr.bf16.mxu1 %v3508_v62  ;;  %v3517_v4 = vadd.f32 %v385_v3, %v3447_v57  ;;  %2795 = vmatpush1.bf16.msra.mxu0 %v3501_v52  ;;  %v3532_v57 = vld [vmem:[#allocation8 + $0x4] ss:$16 sps:$4 sm:$0xff]  }
 0x15d   :  { %2807 = vmatpush1.bf16.msra.mxu1 %v3504_v59  ;;  %2607 = vmatprep.subr.msk.mxu0 %vm433_vm0, %v3512_v45 }
 0x15e   :  { %2610 = vmatprep.subr.msk.mxu1 %vm433_vm0, %v3517_v4 }
 0x160   :  { %2608 = vmatpush1.msk.msra.mxu0 %vm433_vm0, %v3527_v58 }
 0x161   :  { %2611 = vmatpush1.msk.msra.mxu1 %vm433_vm0, %v3521_v5  ;;  %2609 = vmatmul.mubr.msk.f32.vlgmr.msra.gmra.mrb[14].mxu0 %vm429_vm2, %v2606_v6 }
 0x162   :  { %779 = vmatprep.subr.bf16.mxu0 %v3532_v57  ;;  %820 = vmatprep.subr.bf16.mxu1 %v3534_v7 }
 0x163   :  { %2612 = vmatmul.mubr.msk.f32.vlgmr.msra.gmra.mrb[14].mxu1 %vm429_vm2, %v2606_v6  ;;  %780 = vmatpush1.bf16.msra.mxu0 %v3536_v53 }
 0x164   :  { %821 = vmatpush1.bf16.msra.mxu1 %v3540_v8  ;;  %781 = vmatprep.subr.bf16.mxu0 %v3542_v10 }
 0x165   :  { %822 = vmatprep.subr.bf16.mxu1 %v3547_v54  ;;  %811 = vmatprep.mubr.bf16.mxu0 %v4139_v1 }
 0x166   :  { %852 = vmatprep.mubr.bf16.mxu1 %v4139_v1 }
 0x167   :  { %782 = vmatpush1.bf16.msra.mxu0 %v3553_v12 }
 0x168   :  { %823 = vmatpush1.bf16.msra.mxu1 %v3557_v14  ;;  %783 = vmatprep.subr.bf16.mxu0 %v3559_v16 }
 0x169   :  { %824 = vmatprep.subr.bf16.mxu1 %v3562_v17 }
 0x16b   :  { %784 = vmatpush1.bf16.msra.mxu0 %v3567_v18 }
 0x16c   :  { %825 = vmatpush1.bf16.msra.mxu1 %v3571_v19  ;;  %785 = vmatprep.subr.bf16.mxu0 %v3573_v20 }
 0x16d   :  { %826 = vmatprep.subr.bf16.mxu1 %v3576_v21 }
 0x16f   :  { %786 = vmatpush1.bf16.msra.mxu0 %v3579_v22 }
 0x170   :  { %827 = vmatpush1.bf16.msra.mxu1 %v3583_v23  ;;  %787 = vmatprep.subr.bf16.mxu0 %v3585_v24 }
 0x171   :  { %828 = vmatprep.subr.bf16.mxu1 %v3588_v25 }
 0x173   :  { %788 = vmatpush1.bf16.msra.mxu0 %v3591_v26 }
 0x174   :  { %829 = vmatpush1.bf16.msra.mxu1 %v3595_v27  ;;  %789 = vmatprep.subr.bf16.mxu0 %v3597_v29 }
 0x175   :  { %830 = vmatprep.subr.bf16.mxu1 %v3600_v31 }
 0x177   :  { %790 = vmatpush1.bf16.msra.mxu0 %v3603_v33 }
 0x178   :  { %831 = vmatpush1.bf16.msra.mxu1 %v3607_v35  ;;  %791 = vmatprep.subr.bf16.mxu0 %v3609_v37 }
 0x179   :  { %832 = vmatprep.subr.bf16.mxu1 %v3612_v38 }
 0x17b   :  { %792 = vmatpush1.bf16.msra.mxu0 %v3615_v39 }
 0x17c   :  { %833 = vmatpush1.bf16.msra.mxu1 %v3619_v40  ;;  %793 = vmatprep.subr.bf16.mxu0 %v3621_v41 }
 0x17d   :  { %834 = vmatprep.subr.bf16.mxu1 %v3624_v42 }
 0x17f   :  { %794 = vmatpush1.bf16.msra.mxu0 %v3627_v43 }
 0x180   :  { %835 = vmatpush1.bf16.msra.mxu1 %v3631_v44  ;;  %2809 = vmatprep.subr.bf16.mxu0 %v3461_v11 }
 0x181   :  { %2821 = vmatprep.subr.bf16.mxu1 %v3465_v15 }
 0x234   :  { %v512_v47 = vpop.f32.mrb[14].mxu0 }
 0x235   :  { %v2613_v48 = vmul.f32 -1.442695, %v512_v47  ;;  %v514_v49 = vpop.f32.mrb[15].mxu0 }
 0x236   :  { %v2614_v50 = vmul.f32 -1.442695, %v514_v49  ;;  %v583_v55 = vpop.f32.mrb[14].mxu1 }
 0x237   :  { %3052 = vpow2.f32 %v2613_v48  ;;  %v585_v56 = vpop.f32.mrb[15].mxu1  ;;  %v2615_v61 = vmul.f32 -1.442695, %v583_v55 }
 0x238   :  { %3054 = vpow2.f32 %v2614_v50 }
 0x239   :  { %3056 = vpow2.f32 %v2615_v61 }
 0x23a   :  { %3058 = vtanh.f32 %v585_v56  ;;  %v4186_v56 = vld [vmem:[#allocation14_spill] sm:$0xff] }
 0x241   :  { %v3053_v63 = vpop.eup %3052 }
 0x242   :  { %v3055_v2 = vpop.eup %3054  ;;  %v597_v3 = vadd.f32 1.0, %v3053_v63  ;;  %v4187_v63 = vld [vmem:[#allocation15_spill] sm:$0xff] }
 0x243   :  { %v598_v6 = vadd.f32 1.0, %v3055_v2  ;;  %v3057_v46 = vpop.eup %3056  ;;  %v3325_v2 = vmov 3  }
 0x244   :  { %3060 = vrcp.f32 %v597_v3  ;;  %v3059_v1 = vpop.eup %3058  ;;  %v599_v47 = vadd.f32 1.0, %v3057_v46  ;;  %2998 = vset.pattern.permute.xlu1 %v3325_v2  ;;  %v4188_v3 = vld [vmem:[#allocation13_spill] sm:$0xff] }
 0x245   :  { %3062 = vrcp.f32 %v598_v6  ;;  %1289 = vperm.xlu1 %2998, %v4188_v3  }
 0x246   :  { %3064 = vrcp.f32 %v599_v47 }
 0x24e   :  { %v3061_v0 = vpop.eup %3060 }
 0x24f   :  { %v3063_v28 = vpop.eup %3062  ;;  %v608_v15 = vmul.f32 %v3061_v0, %v3059_v1  ;;  %v4184_v0 = vmov 0.0   ;;  %v614_v1 = vpop.permute.xlu0 %613 }
 0x250   :  { %v607_v49 = vmul.f32 0.0, %v3063_v28  ;;  %v3065_v48 = vpop.eup %3064  ;;  %vm615_vm3 = vcmp.eq.s32.totalorder %v614_v1, %v3499_v51 }
 0x251   :  { %v2616_v28 = vsel %vm615_vm3, 1.0, %v4184_v0 }
 0x252   :  { %v3639_v11 = vadd.f32 %v608_v15, %v607_v49  ;;  %v4185_v15 = vmov 0  }
 0x254   :  { %3066 = vtanh.f32 %v3639_v11 }
 0x25e   :  { %v3067_v50 = vpop.eup %3066 }
 0x25f   :  { %v611_v55 = vmul.f32 %v3067_v50, %v3065_v48 }
 0x261   :  { %v618_v61 = vpack.c.bf16 %v611_v55, %v611_v55 }
 0x263   :  { %812 = vmatmul.mubr.bf16.vlgmr.msra.gmra.mrb[16].mxu0 %v618_v61  ;;  %853 = vmatmul.mubr.bf16.vlgmr.msra.gmra.mrb[16].mxu1 %v618_v61 }
 0x264   :  { %2811 = vmatpush1.bf16.msra.mxu0 %v3458_v9  ;;  %2823 = vmatpush1.bf16.msra.mxu1 %v3463_v13 }
 0x265   :  { %2813 = vmatprep.subr.bf16.mxu0 %v3481_v32  ;;  %2825 = vmatprep.subr.bf16.mxu1 %v3485_v36 }
 0x266   :  { %928 = vmatprep.mubr.f32.mxu0 %v4184_v0  ;;  %999 = vmatprep.mubr.f32.mxu1 %v4184_v0 }
 0x268   :  { %2815 = vmatpush1.bf16.msra.mxu0 %v3478_v30  ;;  %2827 = vmatpush1.bf16.msra.mxu1 %v3483_v34 }
 0x269   :  { %2817 = vmatprep.subr.bf16.mxu0 %v3506_v60  ;;  %2829 = vmatprep.subr.bf16.mxu1 %v3508_v62 }
 0x26c   :  { %2819 = vmatpush1.bf16.msra.mxu0 %v3501_v52  ;;  %2831 = vmatpush1.bf16.msra.mxu1 %v3504_v59 }
 0x26d   :  { %2649 = vmatprep.subr.msk.mxu0 %vm433_vm0, %v3512_v45  ;;  %2652 = vmatprep.subr.msk.mxu1 %vm433_vm0, %v3517_v4 }
 0x270   :  { %2650 = vmatpush1.msk.msra.mxu0 %vm433_vm0, %v3527_v58  ;;  %2653 = vmatpush1.msk.msra.mxu1 %vm433_vm0, %v3521_v5 }
 0x271   :  { %2651 = vmatmul.mubr.msk.f32.vlgmr.msra.gmra.mrb[20].mxu0 %vm429_vm2, %v2616_v28  ;;  %2654 = vmatmul.mubr.msk.f32.vlgmr.msra.gmra.mrb[20].mxu1 %vm429_vm2, %v2616_v28 }
 0x272   :  { %1037 = vmatprep.subr.bf16.mxu0 %v3532_v57  ;;  %1078 = vmatprep.subr.bf16.mxu1 %v3534_v7 }
 0x273   :  { %1038 = vmatpush1.bf16.msra.mxu0 %v3536_v53  ;;  %1079 = vmatpush1.bf16.msra.mxu1 %v3540_v8 }
 0x274   :  { %1039 = vmatprep.subr.bf16.mxu0 %v3542_v10  ;;  %1080 = vmatprep.subr.bf16.mxu1 %v3547_v54 }
 0x275   :  { %1069 = vmatprep.mubr.bf16.mxu0 %v4185_v15  ;;  %1110 = vmatprep.mubr.bf16.mxu1 %v4185_v15 }
 0x277   :  { %1040 = vmatpush1.bf16.msra.mxu0 %v3553_v12  ;;  %1081 = vmatpush1.bf16.msra.mxu1 %v3557_v14 }
 0x278   :  { %1041 = vmatprep.subr.bf16.mxu0 %v3559_v16  ;;  %1082 = vmatprep.subr.bf16.mxu1 %v3562_v17 }
 0x27b   :  { %1042 = vmatpush1.bf16.msra.mxu0 %v3567_v18  ;;  %1083 = vmatpush1.bf16.msra.mxu1 %v3571_v19 }
 0x27c   :  { %1043 = vmatprep.subr.bf16.mxu0 %v3573_v20  ;;  %1084 = vmatprep.subr.bf16.mxu1 %v3576_v21 }
 0x27f   :  { %1044 = vmatpush1.bf16.msra.mxu0 %v3579_v22  ;;  %1085 = vmatpush1.bf16.msra.mxu1 %v3583_v23 }
 0x280   :  { %1045 = vmatprep.subr.bf16.mxu0 %v3585_v24  ;;  %1086 = vmatprep.subr.bf16.mxu1 %v3588_v25 }
 0x283   :  { %1046 = vmatpush1.bf16.msra.mxu0 %v3591_v26  ;;  %1087 = vmatpush1.bf16.msra.mxu1 %v3595_v27 }
 0x284   :  { %1047 = vmatprep.subr.bf16.mxu0 %v3597_v29  ;;  %1088 = vmatprep.subr.bf16.mxu1 %v3600_v31 }
 0x287   :  { %1048 = vmatpush1.bf16.msra.mxu0 %v3603_v33  ;;  %1089 = vmatpush1.bf16.msra.mxu1 %v3607_v35 }
 0x288   :  { %1049 = vmatprep.subr.bf16.mxu0 %v3609_v37  ;;  %1090 = vmatprep.subr.bf16.mxu1 %v3612_v38 }
 0x28b   :  { %1050 = vmatpush1.bf16.msra.mxu0 %v3615_v39  ;;  %1091 = vmatpush1.bf16.msra.mxu1 %v3619_v40 }
 0x28c   :  { %1051 = vmatprep.subr.bf16.mxu0 %v3621_v41  ;;  %1092 = vmatprep.subr.bf16.mxu1 %v3624_v42 }
 0x28f   :  { %1052 = vmatpush1.bf16.msra.mxu0 %v3627_v43  ;;  %1093 = vmatpush1.bf16.msra.mxu1 %v3631_v44 }
 0x290   :  { %2833 = vmatprep.subr.bf16.mxu0 %v4186_v56  ;;  %2845 = vmatprep.subr.bf16.mxu1 %v4187_v63 }
 0x336   :  { %v813_v6 = vpop.f32.mrb[16].mxu0  ;;  %v854_v46 = vpop.f32.mrb[16].mxu1 }
 0x337   :  { %v815_v47 = vpop.f32.mrb[17].mxu0  ;;  %v856_v49 = vpop.f32.mrb[17].mxu1 }
 0x338   :  { %v817_v48 = vpop.f32.mrb[18].mxu0  ;;  %v858_v50 = vpop.f32.mrb[18].mxu1 }
 0x339   :  { %v818_v55 = vpop.f32.mrb[19].mxu0  ;;  %v859_v61 = vpop.f32.mrb[19].mxu1 }
 0x344   :  { %v930_v1 = vpop.f32.mrb[20].mxu0  ;;  %v1001_v28 = vpop.f32.mrb[20].mxu1 }
 0x345   :  { %v931_v43 = vadd.f32 %v930_v1, %v813_v6  ;;  %v1002_v44 = vadd.f32 %v1001_v28, %v854_v46  ;;  %v932_v42 = vpop.f32.mrb[21].mxu0  ;;  %v1003_v56 = vpop.f32.mrb[21].mxu1  ;;  %v4193_v28 = vld [vmem:[#allocation20_spill] sm:$0xff] }
 0x346   :  { %v933_v41 = vadd.f32 %v932_v42, %v815_v47  ;;  %v1004_v63 = vadd.f32 %v1003_v56, %v856_v49  ;;  %v4191_v47 = vld [vmem:[#allocation18_spill] sm:$0xff]  ;;  %v4192_v49 = vld [vmem:[#allocation19_spill] sm:$0xff] }
 0x347   :  { %v2655_v40 = vmul.f32 -1.442695, %v931_v43  ;;  %v2657_v3 = vmul.f32 -1.442695, %v1002_v44 }
 0x348   :  { %v2656_v2 = vmul.f32 -1.442695, %v933_v41 }
 0x349   :  { %3068 = vpow2.f32 %v2655_v40 }
 0x34a   :  { %3070 = vpow2.f32 %v2656_v2  ;;  %v4194_v2 = vld [vmem:[#allocation21_spill] sm:$0xff] }
 0x34b   :  { %3072 = vtanh.f32 %v1004_v63  ;;  %v4189_v63 = vld [vmem:[#allocation16_spill] sm:$0xff] }
 0x34c   :  { %3074 = vpow2.f32 %v2657_v3  ;;  %v4190_v3 = vld [vmem:[#allocation17_spill] sm:$0xff] }
 0x353   :  { %v3069_v39 = vpop.eup %3068 }
 0x354   :  { %v1015_v38 = vadd.f32 1.0, %v3069_v39  ;;  %v3071_v48 = vpop.eup %3070 }
 0x355   :  { %v1016_v50 = vadd.f32 1.0, %v3071_v48  ;;  %v3073_v55 = vpop.eup %3072  ;;  %v4195_v48 = vld [vmem:[#allocation22_spill] sm:$0xff] }
 0x356   :  { %3076 = vrcp.f32 %v1015_v38  ;;  %v3075_v6 = vpop.eup %3074 }
 0x357   :  { %3078 = vrcp.f32 %v1016_v50  ;;  %v1017_v42 = vadd.f32 1.0, %v3075_v6  ;;  %v4196_v50 = vld [vmem:[#allocation14_spill] sm:$0xff]  ;;  %v3326_v6 = vmov 4  }
 0x358   :  { %2999 = vset.pattern.permute.xlu1 %v3326_v6 }
 0x359   :  { %3080 = vrcp.f32 %v1017_v42 }
 0x360   :  { %v3077_v46 = vpop.eup %3076 }
 0x361   :  { %v1026_v61 = vmul.f32 %v3077_v46, %v3073_v55  ;;  %v3079_v1 = vpop.eup %3078  ;;  %v4197_v55 = vld [vmem:[#allocation15_spill] sm:$0xff]  ;;  %v4198_v46 = vld [vmem:[#allocation13_spill] sm:$0xff] }
 0x362   :  { %v1025_v43 = vmul.f32 %v3079_v1, %v3639_v11  ;;  %v1032_v11 = vpop.permute.xlu1 %1031  ;;  %1547 = vperm.xlu1 %2999, %v4198_v46  }
 0x363   :  { %v3081_v39 = vpop.eup %3080  ;;  %vm1033_vm4 = vcmp.eq.s32.totalorder %v1032_v11, %v3499_v51 }
 0x364   :  { %v3704_v41 = vadd.f32 %v1026_v61, %v1025_v43  ;;  %v2658_v38 = vsel %vm1033_vm4, 1.0, %v4184_v0 }
 0x366   :  { %3082 = vtanh.f32 %v3704_v41 }
 0x370   :  { %v3083_v40 = vpop.eup %3082 }
 0x371   :  { %v1029_v44 = vmul.f32 %v3083_v40, %v3081_v39 }
 0x373   :  { %v1036_v56 = vpack.c.bf16 %v1029_v44, %v1029_v44 }
 0x375   :  { %1070 = vmatmul.mubr.bf16.vlgmr.msra.gmra.mrb[24].mxu0 %v1036_v56  ;;  %1111 = vmatmul.mubr.bf16.vlgmr.msra.gmra.mrb[24].mxu1 %v1036_v56 }
 0x376   :  { %2835 = vmatpush1.bf16.msra.mxu0 %v3458_v9  ;;  %2847 = vmatpush1.bf16.msra.mxu1 %v3463_v13 }
 0x377   :  { %2837 = vmatprep.subr.bf16.mxu0 %v3481_v32  ;;  %2849 = vmatprep.subr.bf16.mxu1 %v3485_v36 }
 0x378   :  { %1186 = vmatprep.mubr.f32.mxu0 %v4184_v0  ;;  %1257 = vmatprep.mubr.f32.mxu1 %v4184_v0 }
 0x37a   :  { %2839 = vmatpush1.bf16.msra.mxu0 %v3478_v30  ;;  %2851 = vmatpush1.bf16.msra.mxu1 %v3483_v34 }
 0x37b   :  { %2841 = vmatprep.subr.bf16.mxu0 %v3506_v60  ;;  %2853 = vmatprep.subr.bf16.mxu1 %v3508_v62 }
 0x37e   :  { %2843 = vmatpush1.bf16.msra.mxu0 %v3501_v52  ;;  %2855 = vmatpush1.bf16.msra.mxu1 %v3504_v59 }
 0x37f   :  { %2659 = vmatprep.subr.msk.mxu0 %vm433_vm0, %v3512_v45  ;;  %2662 = vmatprep.subr.msk.mxu1 %vm433_vm0, %v3517_v4 }
 0x382   :  { %2660 = vmatpush1.msk.msra.mxu0 %vm433_vm0, %v3527_v58  ;;  %2663 = vmatpush1.msk.msra.mxu1 %vm433_vm0, %v3521_v5 }
 0x383   :  { %2661 = vmatmul.mubr.msk.f32.vlgmr.msra.gmra.mrb[22].mxu0 %vm429_vm2, %v2658_v38  ;;  %2664 = vmatmul.mubr.msk.f32.vlgmr.msra.gmra.mrb[22].mxu1 %vm429_vm2, %v2658_v38 }
 0x384   :  { %1295 = vmatprep.subr.bf16.mxu0 %v3532_v57  ;;  %1336 = vmatprep.subr.bf16.mxu1 %v3534_v7 }
 0x385   :  { %1296 = vmatpush1.bf16.msra.mxu0 %v3536_v53  ;;  %1337 = vmatpush1.bf16.msra.mxu1 %v3540_v8 }
 0x386   :  { %1297 = vmatprep.subr.bf16.mxu0 %v3542_v10  ;;  %1338 = vmatprep.subr.bf16.mxu1 %v3547_v54 }
 0x387   :  { %1327 = vmatprep.mubr.bf16.mxu0 %v4185_v15  ;;  %1368 = vmatprep.mubr.bf16.mxu1 %v4185_v15 }
 0x389   :  { %1298 = vmatpush1.bf16.msra.mxu0 %v3553_v12  ;;  %1339 = vmatpush1.bf16.msra.mxu1 %v3557_v14 }
 0x38a   :  { %1299 = vmatprep.subr.bf16.mxu0 %v3559_v16  ;;  %1340 = vmatprep.subr.bf16.mxu1 %v3562_v17 }
 0x38d   :  { %1300 = vmatpush1.bf16.msra.mxu0 %v3567_v18  ;;  %1341 = vmatpush1.bf16.msra.mxu1 %v3571_v19 }
 0x38e   :  { %1301 = vmatprep.subr.bf16.mxu0 %v3573_v20  ;;  %1342 = vmatprep.subr.bf16.mxu1 %v3576_v21 }
 0x391   :  { %1302 = vmatpush1.bf16.msra.mxu0 %v3579_v22  ;;  %1343 = vmatpush1.bf16.msra.mxu1 %v3583_v23 }
 0x392   :  { %1303 = vmatprep.subr.bf16.mxu0 %v3585_v24  ;;  %1344 = vmatprep.subr.bf16.mxu1 %v3588_v25 }
 0x395   :  { %1304 = vmatpush1.bf16.msra.mxu0 %v3591_v26  ;;  %1345 = vmatpush1.bf16.msra.mxu1 %v3595_v27 }
 0x396   :  { %1305 = vmatprep.subr.bf16.mxu0 %v3597_v29  ;;  %1346 = vmatprep.subr.bf16.mxu1 %v3600_v31 }
 0x399   :  { %1306 = vmatpush1.bf16.msra.mxu0 %v3603_v33  ;;  %1347 = vmatpush1.bf16.msra.mxu1 %v3607_v35 }
 0x39a   :  { %1307 = vmatprep.subr.bf16.mxu0 %v3609_v37  ;;  %1348 = vmatprep.subr.bf16.mxu1 %v4189_v63 }
 0x39d   :  { %1308 = vmatpush1.bf16.msra.mxu0 %v4190_v3  ;;  %1349 = vmatpush1.bf16.msra.mxu1 %v4191_v47 }
 0x39e   :  { %1309 = vmatprep.subr.bf16.mxu0 %v4192_v49  ;;  %1350 = vmatprep.subr.bf16.mxu1 %v4193_v28 }
 0x3a1   :  { %1310 = vmatpush1.bf16.msra.mxu0 %v4194_v2  ;;  %1351 = vmatpush1.bf16.msra.mxu1 %v4195_v48 }
 0x3a2   :  { %2857 = vmatprep.subr.bf16.mxu0 %v4196_v50  ;;  %2869 = vmatprep.subr.bf16.mxu1 %v4197_v55 }
 0x448   :  { %v1071_v61 = vpop.f32.mrb[24].mxu0  ;;  %v1112_v1 = vpop.f32.mrb[24].mxu1 }
 0x449   :  { %v1073_v42 = vpop.f32.mrb[25].mxu0  ;;  %v1114_v43 = vpop.f32.mrb[25].mxu1 }
 0x44a   :  { %v1075_v39 = vpop.f32.mrb[26].mxu0  ;;  %v1116_v40 = vpop.f32.mrb[26].mxu1 }
 0x44b   :  { %v1076_v44 = vpop.f32.mrb[27].mxu0  ;;  %v1117_v56 = vpop.f32.mrb[27].mxu1 }
 0x456   :  { %v1188_v11 = vpop.f32.mrb[22].mxu0  ;;  %v1259_v38 = vpop.f32.mrb[22].mxu1 }
 0x457   :  { %v1189_v2 = vadd.f32 %v1188_v11, %v1071_v61  ;;  %v1260_v48 = vadd.f32 %v1259_v38, %v1112_v1  ;;  %v1190_v28 = vpop.f32.mrb[23].mxu0  ;;  %v1261_v50 = vpop.f32.mrb[23].mxu1  ;;  %v4202_v38 = vld [vmem:[#allocation19_spill] sm:$0xff] }
 0x458   :  { %v1191_v49 = vadd.f32 %v1190_v28, %v1073_v42  ;;  %v1262_v55 = vadd.f32 %v1261_v50, %v1114_v43  ;;  %v4200_v42 = vld [vmem:[#allocation17_spill] sm:$0xff]  ;;  %v4201_v43 = vld [vmem:[#allocation18_spill] sm:$0xff] }
 0x459   :  { %v2665_v47 = vmul.f32 -1.442695, %v1189_v2  ;;  %v2667_v46 = vmul.f32 -1.442695, %v1260_v48 }
 0x45a   :  { %v2666_v6 = vmul.f32 -1.442695, %v1191_v49 }
 0x45b   :  { %3084 = vpow2.f32 %v2665_v47 }
 0x45c   :  { %3086 = vpow2.f32 %v2666_v6  ;;  %v4203_v6 = vld [vmem:[#allocation20_spill] sm:$0xff] }
 0x45d   :  { %3088 = vtanh.f32 %v1262_v55  ;;  %v4199_v55 = vld [vmem:[#allocation16_spill] sm:$0xff] }
 0x45e   :  { %3090 = vpow2.f32 %v2667_v46  ;;  %v4204_v46 = vld [vmem:[#allocation21_spill] sm:$0xff] }
 0x465   :  { %v3085_v3 = vpop.eup %3084 }
 0x466   :  { %v1273_v63 = vadd.f32 1.0, %v3085_v3  ;;  %v3087_v39 = vpop.eup %3086 }
 0x467   :  { %v1274_v40 = vadd.f32 1.0, %v3087_v39  ;;  %v3089_v44 = vpop.eup %3088  ;;  %v4205_v39 = vld [vmem:[#allocation22_spill] sm:$0xff] }
 0x468   :  { %3092 = vrcp.f32 %v1273_v63  ;;  %v3091_v61 = vpop.eup %3090 }
 0x469   :  { %3094 = vrcp.f32 %v1274_v40  ;;  %v1275_v28 = vadd.f32 1.0, %v3091_v61  ;;  %v4206_v40 = vld [vmem:[#allocation14_spill] sm:$0xff]  ;;  %v3327_v61 = vmov 5  }
 0x46a   :  { %3000 = vset.pattern.permute.xlu0 %v3327_v61 }
 0x46b   :  { %3096 = vrcp.f32 %v1275_v28 }
 0x472   :  { %v3093_v1 = vpop.eup %3092 }
 0x473   :  { %v1284_v56 = vmul.f32 %v3093_v1, %v3089_v44  ;;  %v3095_v11 = vpop.eup %3094  ;;  %v4207_v44 = vld [vmem:[#allocation15_spill] sm:$0xff]  ;;  %v3832_v1 = vld [vmem:[#allocation3] sm:$0xff] }
 0x474   :  { %v1283_v2 = vmul.f32 %v3095_v11, %v3704_v41  ;;  %v1290_v41 = vpop.permute.xlu1 %1289  ;;  %4208 = vst [vmem:[#allocation13_spill] sm:$0xff] %v3832_v1  ;;  %1805 = vperm.xlu0 %3000, %v3832_v1  }
 0x475   :  { %v3097_v3 = vpop.eup %3096  ;;  %vm1291_vm5 = vcmp.eq.s32.totalorder %v1290_v41, %v3499_v51 }
 0x476   :  { %v3769_v49 = vadd.f32 %v1284_v56, %v1283_v2  ;;  %v2668_v63 = vsel %vm1291_vm5, 1.0, %v4184_v0 }
 0x478   :  { %3098 = vtanh.f32 %v3769_v49 }
 0x482   :  { %v3099_v47 = vpop.eup %3098 }
 0x483   :  { %v1287_v48 = vmul.f32 %v3099_v47, %v3097_v3 }
 0x485   :  { %v1294_v50 = vpack.c.bf16 %v1287_v48, %v1287_v48 }
 0x487   :  { %1328 = vmatmul.mubr.bf16.vlgmr.msra.gmra.mrb[28].mxu0 %v1294_v50  ;;  %1369 = vmatmul.mubr.bf16.vlgmr.msra.gmra.mrb[28].mxu1 %v1294_v50 }
 0x488   :  { %2859 = vmatpush1.bf16.msra.mxu0 %v3458_v9  ;;  %2871 = vmatpush1.bf16.msra.mxu1 %v3463_v13 }
 0x489   :  { %2861 = vmatprep.subr.bf16.mxu0 %v3481_v32  ;;  %2873 = vmatprep.subr.bf16.mxu1 %v3485_v36 }
 0x48a   :  { %1444 = vmatprep.mubr.f32.mxu0 %v4184_v0  ;;  %1515 = vmatprep.mubr.f32.mxu1 %v4184_v0 }
 0x48c   :  { %2863 = vmatpush1.bf16.msra.mxu0 %v3478_v30  ;;  %2875 = vmatpush1.bf16.msra.mxu1 %v3483_v34 }
 0x48d   :  { %2865 = vmatprep.subr.bf16.mxu0 %v3506_v60  ;;  %2877 = vmatprep.subr.bf16.mxu1 %v3508_v62 }
 0x490   :  { %2867 = vmatpush1.bf16.msra.mxu0 %v3501_v52  ;;  %2879 = vmatpush1.bf16.msra.mxu1 %v3504_v59 }
 0x491   :  { %2669 = vmatprep.subr.msk.mxu0 %vm433_vm0, %v3512_v45  ;;  %2672 = vmatprep.subr.msk.mxu1 %vm433_vm0, %v3517_v4 }
 0x494   :  { %2670 = vmatpush1.msk.msra.mxu0 %vm433_vm0, %v3527_v58  ;;  %2673 = vmatpush1.msk.msra.mxu1 %vm433_vm0, %v3521_v5 }
 0x495   :  { %2671 = vmatmul.mubr.msk.f32.vlgmr.msra.gmra.mrb[32].mxu0 %vm429_vm2, %v2668_v63  ;;  %2674 = vmatmul.mubr.msk.f32.vlgmr.msra.gmra.mrb[32].mxu1 %vm429_vm2, %v2668_v63 }
 0x496   :  { %1553 = vmatprep.subr.bf16.mxu0 %v3532_v57  ;;  %1594 = vmatprep.subr.bf16.mxu1 %v3534_v7 }
 0x497   :  { %1554 = vmatpush1.bf16.msra.mxu0 %v3536_v53  ;;  %1595 = vmatpush1.bf16.msra.mxu1 %v3540_v8 }
 0x498   :  { %1555 = vmatprep.subr.bf16.mxu0 %v3542_v10  ;;  %1596 = vmatprep.subr.bf16.mxu1 %v3547_v54 }
 0x499   :  { %1585 = vmatprep.mubr.bf16.mxu0 %v4185_v15  ;;  %1626 = vmatprep.mubr.bf16.mxu1 %v4185_v15 }
 0x49b   :  { %1556 = vmatpush1.bf16.msra.mxu0 %v3553_v12  ;;  %1597 = vmatpush1.bf16.msra.mxu1 %v3557_v14 }
 0x49c   :  { %1557 = vmatprep.subr.bf16.mxu0 %v3559_v16  ;;  %1598 = vmatprep.subr.bf16.mxu1 %v3562_v17 }
 0x49f   :  { %1558 = vmatpush1.bf16.msra.mxu0 %v3567_v18  ;;  %1599 = vmatpush1.bf16.msra.mxu1 %v3571_v19 }
 0x4a0   :  { %1559 = vmatprep.subr.bf16.mxu0 %v3573_v20  ;;  %1600 = vmatprep.subr.bf16.mxu1 %v3576_v21 }
 0x4a3   :  { %1560 = vmatpush1.bf16.msra.mxu0 %v3579_v22  ;;  %1601 = vmatpush1.bf16.msra.mxu1 %v3583_v23 }
 0x4a4   :  { %1561 = vmatprep.subr.bf16.mxu0 %v3585_v24  ;;  %1602 = vmatprep.subr.bf16.mxu1 %v3588_v25 }
 0x4a7   :  { %1562 = vmatpush1.bf16.msra.mxu0 %v3591_v26  ;;  %1603 = vmatpush1.bf16.msra.mxu1 %v3595_v27 }
 0x4a8   :  { %1563 = vmatprep.subr.bf16.mxu0 %v3597_v29  ;;  %1604 = vmatprep.subr.bf16.mxu1 %v3600_v31 }
 0x4ab   :  { %1564 = vmatpush1.bf16.msra.mxu0 %v3603_v33  ;;  %1605 = vmatpush1.bf16.msra.mxu1 %v3607_v35 }
 0x4ac   :  { %1565 = vmatprep.subr.bf16.mxu0 %v3609_v37  ;;  %1606 = vmatprep.subr.bf16.mxu1 %v4199_v55 }
 0x4af   :  { %1566 = vmatpush1.bf16.msra.mxu0 %v4200_v42  ;;  %1607 = vmatpush1.bf16.msra.mxu1 %v4201_v43 }
 0x4b0   :  { %1567 = vmatprep.subr.bf16.mxu0 %v4202_v38  ;;  %1608 = vmatprep.subr.bf16.mxu1 %v4203_v6 }
 0x4b3   :  { %1568 = vmatpush1.bf16.msra.mxu0 %v4204_v46  ;;  %1609 = vmatpush1.bf16.msra.mxu1 %v4205_v39 }
 0x4b4   :  { %2881 = vmatprep.subr.bf16.mxu0 %v4206_v40  ;;  %2893 = vmatprep.subr.bf16.mxu1 %v4207_v44 }
 0x55a   :  { %v1329_v56 = vpop.f32.mrb[28].mxu0  ;;  %v1370_v11 = vpop.f32.mrb[28].mxu1 }
 0x55b   :  { %v1331_v28 = vpop.f32.mrb[29].mxu0  ;;  %v1372_v2 = vpop.f32.mrb[29].mxu1 }
 0x55c   :  { %v1333_v3 = vpop.f32.mrb[30].mxu0  ;;  %v1374_v47 = vpop.f32.mrb[30].mxu1 }
 0x55d   :  { %v1334_v48 = vpop.f32.mrb[31].mxu0  ;;  %v1375_v50 = vpop.f32.mrb[31].mxu1 }
 0x568   :  { %v1446_v41 = vpop.f32.mrb[32].mxu0  ;;  %v1517_v63 = vpop.f32.mrb[32].mxu1 }
 0x569   :  { %v1447_v39 = vadd.f32 %v1446_v41, %v1329_v56  ;;  %v1518_v40 = vadd.f32 %v1517_v63, %v1370_v11  ;;  %v1448_v46 = vpop.f32.mrb[33].mxu0  ;;  %v1519_v44 = vpop.f32.mrb[33].mxu1 }
 0x56a   :  { %v1449_v6 = vadd.f32 %v1448_v46, %v1331_v28  ;;  %v1520_v61 = vadd.f32 %v1519_v44, %v1372_v2 }
 0x56b   :  { %v2675_v38 = vmul.f32 -1.442695, %v1447_v39  ;;  %v2677_v1 = vmul.f32 -1.442695, %v1518_v40 }
 0x56c   :  { %v2676_v43 = vmul.f32 -1.442695, %v1449_v6 }
 0x56d   :  { %3100 = vpow2.f32 %v2675_v38 }
 0x56e   :  { %3102 = vpow2.f32 %v2676_v43 }
 0x56f   :  { %3104 = vtanh.f32 %v1520_v61 }
 0x570   :  { %3106 = vpow2.f32 %v2677_v1 }
 0x577   :  { %v3101_v42 = vpop.eup %3100 }
 0x578   :  { %v1531_v55 = vadd.f32 1.0, %v3101_v42  ;;  %v3103_v3 = vpop.eup %3102 }
 0x579   :  { %v1532_v47 = vadd.f32 1.0, %v3103_v3  ;;  %v3105_v48 = vpop.eup %3104 }
 0x57a   :  { %3108 = vrcp.f32 %v1531_v55  ;;  %v3107_v56 = vpop.eup %3106 }
 0x57b   :  { %3110 = vrcp.f32 %v1532_v47  ;;  %v1533_v46 = vadd.f32 1.0, %v3107_v56 }
 0x57d   :  { %3112 = vrcp.f32 %v1533_v46 }
 0x584   :  { %v3109_v11 = vpop.eup %3108 }
 0x585   :  { %v1542_v50 = vmul.f32 %v3109_v11, %v3105_v48  ;;  %v3111_v41 = vpop.eup %3110 }
 0x586   :  { %v1541_v39 = vmul.f32 %v3111_v41, %v3769_v49  ;;  %v1548_v49 = vpop.permute.xlu1 %1547 }
 0x587   :  { %v3113_v42 = vpop.eup %3112  ;;  %vm1549_vm6 = vcmp.eq.s32.totalorder %v1548_v49, %v3499_v51 }
 0x588   :  { %v3836_v6 = vadd.f32 %v1542_v50, %v1541_v39  ;;  %v2678_v55 = vsel %vm1549_vm6, 1.0, %v4184_v0 }
 0x58a   :  { %3114 = vtanh.f32 %v3836_v6 }
 0x594   :  { %v3115_v43 = vpop.eup %3114 }
 0x595   :  { %v1545_v38 = vmul.f32 %v3115_v43, %v3113_v42 }
 0x597   :  { %v1552_v40 = vpack.c.bf16 %v1545_v38, %v1545_v38 }
 0x599   :  { %1586 = vmatmul.mubr.bf16.vlgmr.msra.gmra.mrb[36].mxu0 %v1552_v40  ;;  %1627 = vmatmul.mubr.bf16.vlgmr.msra.gmra.mrb[36].mxu1 %v1552_v40 }
 0x59a   :  { %2883 = vmatpush1.bf16.msra.mxu0 %v3458_v9  ;;  %2895 = vmatpush1.bf16.msra.mxu1 %v3463_v13 }
 0x59b   :  { %2885 = vmatprep.subr.bf16.mxu0 %v3481_v32  ;;  %2897 = vmatprep.subr.bf16.mxu1 %v3485_v36 }
 0x59c   :  { %1702 = vmatprep.mubr.f32.mxu0 %v4184_v0  ;;  %1773 = vmatprep.mubr.f32.mxu1 %v4184_v0 }
 0x59e   :  { %2887 = vmatpush1.bf16.msra.mxu0 %v3478_v30  ;;  %2899 = vmatpush1.bf16.msra.mxu1 %v3483_v34 }
 0x59f   :  { %2889 = vmatprep.subr.bf16.mxu0 %v3506_v60  ;;  %2901 = vmatprep.subr.bf16.mxu1 %v3508_v62 }
 0x5a2   :  { %2891 = vmatpush1.bf16.msra.mxu0 %v3501_v52  ;;  %2903 = vmatpush1.bf16.msra.mxu1 %v3504_v59 }
 0x5a3   :  { %2679 = vmatprep.subr.msk.mxu0 %vm433_vm0, %v3512_v45  ;;  %2682 = vmatprep.subr.msk.mxu1 %vm433_vm0, %v3517_v4 }
 0x5a6   :  { %2680 = vmatpush1.msk.msra.mxu0 %vm433_vm0, %v3527_v58  ;;  %2683 = vmatpush1.msk.msra.mxu1 %vm433_vm0, %v3521_v5 }
 0x5a7   :  { %2681 = vmatmul.mubr.msk.f32.vlgmr.msra.gmra.mrb[34].mxu0 %vm429_vm2, %v2678_v55  ;;  %2684 = vmatmul.mubr.msk.f32.vlgmr.msra.gmra.mrb[34].mxu1 %vm429_vm2, %v2678_v55 }
 0x5a8   :  { %1811 = vmatprep.subr.bf16.mxu0 %v3532_v57  ;;  %1852 = vmatprep.subr.bf16.mxu1 %v3534_v7  ;;  %v4209_v57 = vld [vmem:[#allocation16_spill] sm:$0xff]  ;;  %v4210_v7 = vld [vmem:[#allocation17_spill] sm:$0xff] }
 0x5a9   :  { %1812 = vmatpush1.bf16.msra.mxu0 %v3536_v53  ;;  %1853 = vmatpush1.bf16.msra.mxu1 %v3540_v8  ;;  %v4211_v53 = vld [vmem:[#allocation18_spill] sm:$0xff]  ;;  %v4212_v8 = vld [vmem:[#allocation19_spill] sm:$0xff] }
 0x5aa   :  { %1813 = vmatprep.subr.bf16.mxu0 %v3542_v10  ;;  %1854 = vmatprep.subr.bf16.mxu1 %v3547_v54  ;;  %v4213_v10 = vld [vmem:[#allocation20_spill] sm:$0xff]  ;;  %v4214_v54 = vld [vmem:[#allocation21_spill] sm:$0xff] }
 0x5ab   :  { %1843 = vmatprep.mubr.bf16.mxu0 %v4185_v15  ;;  %1884 = vmatprep.mubr.bf16.mxu1 %v4185_v15 }
 0x5ad   :  { %1814 = vmatpush1.bf16.msra.mxu0 %v3553_v12  ;;  %1855 = vmatpush1.bf16.msra.mxu1 %v3557_v14  ;;  %v4215_v12 = vld [vmem:[#allocation22_spill] sm:$0xff] }
 0x5ae   :  { %1815 = vmatprep.subr.bf16.mxu0 %v3559_v16  ;;  %1856 = vmatprep.subr.bf16.mxu1 %v3562_v17  ;;  %v4216_v14 = vld [vmem:[#allocation14_spill] sm:$0xff]  ;;  %v4217_v16 = vld [vmem:[#allocation15_spill] sm:$0xff]  ;;  %v3328_v17 = vmov 6  }
 0x5af   :  { %3001 = vset.pattern.permute.xlu1 %v3328_v17  ;;  %v3948_v17 = vld [vmem:[#allocation8 + $0x20] ss:$16 sps:$4 sm:$0xff]  }
 0x5b1   :  { %1816 = vmatpush1.bf16.msra.mxu0 %v3567_v18  ;;  %1857 = vmatpush1.bf16.msra.mxu1 %v3571_v19  ;;  %v4218_v18 = vld [vmem:[#allocation13_spill] sm:$0xff] }
 0x5b2   :  { %1817 = vmatprep.subr.bf16.mxu0 %v3573_v20  ;;  %1858 = vmatprep.subr.bf16.mxu1 %v3576_v21 }
 0x5b3   :  { %2063 = vperm.xlu1 %3001, %v4218_v18  }
 0x5b5   :  { %1818 = vmatpush1.bf16.msra.mxu0 %v3579_v22  ;;  %1859 = vmatpush1.bf16.msra.mxu1 %v3583_v23 }
 0x5b6   :  { %1819 = vmatprep.subr.bf16.mxu0 %v3585_v24  ;;  %1860 = vmatprep.subr.bf16.mxu1 %v3588_v25 }
 0x5b9   :  { %1820 = vmatpush1.bf16.msra.mxu0 %v3591_v26  ;;  %1861 = vmatpush1.bf16.msra.mxu1 %v3595_v27 }
 0x5ba   :  { %1821 = vmatprep.subr.bf16.mxu0 %v3597_v29  ;;  %1862 = vmatprep.subr.bf16.mxu1 %v3600_v31 }
 0x5bd   :  { %1822 = vmatpush1.bf16.msra.mxu0 %v3603_v33  ;;  %1863 = vmatpush1.bf16.msra.mxu1 %v3607_v35 }
 0x5be   :  { %1823 = vmatprep.subr.bf16.mxu0 %v3609_v37  ;;  %1864 = vmatprep.subr.bf16.mxu1 %v4209_v57 }
 0x5c1   :  { %1824 = vmatpush1.bf16.msra.mxu0 %v4210_v7  ;;  %1865 = vmatpush1.bf16.msra.mxu1 %v4211_v53  ;;  %v3928_v7 = vld [vmem:[#allocation8 + $0x4] ss:$16 sps:$4 sm:$0xff]   ;;  %v3931_v53 = vld [vmem:[#allocation8 + $0xc] ss:$16 sps:$4 sm:$0xff]  }
 0x5c2   :  { %1825 = vmatprep.subr.bf16.mxu0 %v4212_v8  ;;  %1866 = vmatprep.subr.bf16.mxu1 %v4213_v10  ;;  %v3934_v8 = vld [vmem:[#allocation8] ss:$16 sps:$4 sm:$0xff]   ;;  %v3937_v10 = vld [vmem:[#allocation8 + $0x8] ss:$16 sps:$4 sm:$0xff]  }
 0x5c5   :  { %1826 = vmatpush1.bf16.msra.mxu0 %v4214_v54  ;;  %1867 = vmatpush1.bf16.msra.mxu1 %v4215_v12  ;;  %v3940_v54 = vld [vmem:[#allocation8 + $0x24] ss:$16 sps:$4 sm:$0xff]   ;;  %v3943_v12 = vld [vmem:[#allocation8 + $0x2c] ss:$16 sps:$4 sm:$0xff]  }
 0x5c6   :  { %2905 = vmatprep.subr.bf16.mxu0 %v4216_v14  ;;  %2917 = vmatprep.subr.bf16.mxu1 %v4217_v16 }
 0x66c   :  { %v1587_v19 = vpop.f32.mrb[36].mxu0  ;;  %v1628_v20 = vpop.f32.mrb[36].mxu1 }
 0x66d   :  { %v1589_v21 = vpop.f32.mrb[37].mxu0  ;;  %v1630_v22 = vpop.f32.mrb[37].mxu1 }
 0x66e   :  { %v1591_v23 = vpop.f32.mrb[38].mxu0  ;;  %v1632_v24 = vpop.f32.mrb[38].mxu1 }
 0x66f   :  { %v1592_v25 = vpop.f32.mrb[39].mxu0  ;;  %v1633_v26 = vpop.f32.mrb[39].mxu1  ;;  %v3963_v23 = vld [vmem:[#allocation8 + $0x48] ss:$16 sps:$4 sm:$0xff]   ;;  %v3966_v24 = vld [vmem:[#allocation8 + $0x64] ss:$16 sps:$4 sm:$0xff]  }
 0x670   :  { %v3969_v25 = vld [vmem:[#allocation8 + $0x6c] ss:$16 sps:$4 sm:$0xff]   ;;  %v3972_v26 = vld [vmem:[#allocation8 + $0x60] ss:$16 sps:$4 sm:$0xff]  }
 0x67a   :  { %v1704_v27 = vpop.f32.mrb[34].mxu0  ;;  %v1775_v29 = vpop.f32.mrb[34].mxu1 }
 0x67b   :  { %v1705_v31 = vadd.f32 %v1704_v27, %v1587_v19  ;;  %v1776_v33 = vadd.f32 %v1775_v29, %v1628_v20  ;;  %v1706_v35 = vpop.f32.mrb[35].mxu0  ;;  %v1777_v37 = vpop.f32.mrb[35].mxu1  ;;  %v3951_v19 = vld [vmem:[#allocation8 + $0x28] ss:$16 sps:$4 sm:$0xff]   ;;  %v3954_v20 = vld [vmem:[#allocation8 + $0x44] ss:$16 sps:$4 sm:$0xff]  }
 0x67c   :  { %v1707_v44 = vadd.f32 %v1706_v35, %v1589_v21  ;;  %v1778_v1 = vadd.f32 %v1777_v37, %v1630_v22  ;;  %v3957_v21 = vld [vmem:[#allocation8 + $0x4c] ss:$16 sps:$4 sm:$0xff]   ;;  %v3960_v22 = vld [vmem:[#allocation8 + $0x40] ss:$16 sps:$4 sm:$0xff]   ;;  %v3975_v27 = vld [vmem:[#allocation8 + $0x68] ss:$16 sps:$4 sm:$0xff]  }
 0x67d   :  { %v2685_v28 = vmul.f32 -1.442695, %v1705_v31  ;;  %v2687_v63 = vmul.f32 -1.442695, %v1776_v33  ;;  %v3978_v29 = vld [vmem:[#allocation8 + $0x84] ss:$16 sps:$4 sm:$0xff]  }
 0x67e   :  { %v2686_v2 = vmul.f32 -1.442695, %v1707_v44  ;;  %v3981_v31 = vld [vmem:[#allocation8 + $0x8c] ss:$16 sps:$4 sm:$0xff]   ;;  %v3984_v33 = vld [vmem:[#allocation8 + $0x80] ss:$16 sps:$4 sm:$0xff]  }
 0x67f   :  { %3116 = vpow2.f32 %v2685_v28  ;;  %v3987_v35 = vld [vmem:[#allocation8 + $0x88] ss:$16 sps:$4 sm:$0xff]   ;;  %v3990_v37 = vld [vmem:[#allocation8 + $0xa4] ss:$16 sps:$4 sm:$0xff]   ;;  %v3993_v44 = vld [vmem:[#allocation8 + $0xac] ss:$16 sps:$4 sm:$0xff]  }
 0x680   :  { %3118 = vpow2.f32 %v2686_v2  ;;  %v3999_v28 = vld [vmem:[#allocation8 + $0xa8] ss:$16 sps:$4 sm:$0xff]   ;;  %v4002_v2 = vld [vmem:[#allocation8 + $0xc4] ss:$16 sps:$4 sm:$0xff]  }
 0x681   :  { %3120 = vtanh.f32 %v1778_v1  ;;  %v3996_v1 = vld [vmem:[#allocation8 + $0xa0] ss:$16 sps:$4 sm:$0xff]  }
 0x682   :  { %3122 = vpow2.f32 %v2687_v63  ;;  %v4005_v63 = vld [vmem:[#allocation8 + $0xcc] ss:$16 sps:$4 sm:$0xff]  }
 0x683   :  { %4219 = vst [vmem:[#allocation16_spill] sm:$0xff] %v4005_v63 }
 0x689   :  { %v3117_v61 = vpop.eup %3116 }
 0x68a   :  { %v1789_v3 = vadd.f32 1.0, %v3117_v61  ;;  %v3119_v47 = vpop.eup %3118  ;;  %v4008_v61 = vld [vmem:[#allocation8 + $0xc0] ss:$16 sps:$4 sm:$0xff]  }
 0x68b   :  { %v1790_v48 = vadd.f32 1.0, %v3119_v47  ;;  %v3121_v56 = vpop.eup %3120  ;;  %4220 = vst [vmem:[#allocation17_spill] sm:$0xff] %v4008_v61  ;;  %v4014_v47 = vld [vmem:[#allocation8 + $0xe4] ss:$16 sps:$4 sm:$0xff]  }
 0x68c   :  { %3124 = vrcp.f32 %v1789_v3  ;;  %v3123_v11 = vpop.eup %3122  ;;  %v4011_v3 = vld [vmem:[#allocation8 + $0xc8] ss:$16 sps:$4 sm:$0xff]   ;;  %4222 = vst [vmem:[#allocation19_spill] sm:$0xff] %v4014_v47 }
 0x68d   :  { %3126 = vrcp.f32 %v1790_v48  ;;  %v1791_v39 = vadd.f32 1.0, %v3123_v11  ;;  %4221 = vst [vmem:[#allocation18_spill] sm:$0xff] %v4011_v3  ;;  %v4017_v48 = vld [vmem:[#allocation8 + $0xec] ss:$16 sps:$4 sm:$0xff]   ;;  %v4023_v11 = vld [vmem:[#allocation8 + $0xe8] ss:$16 sps:$4 sm:$0xff]  }
 0x68e   :  { %4223 = vst [vmem:[#allocation20_spill] sm:$0xff] %v4017_v48  ;;  %4225 = vst [vmem:[#allocation22_spill] sm:$0xff] %v4023_v11 }
 0x68f   :  { %3128 = vrcp.f32 %v1791_v39 }
 0x696   :  { %v3125_v50 = vpop.eup %3124 }
 0x697   :  { %v1800_v41 = vmul.f32 %v3125_v50, %v3121_v56  ;;  %v3127_v46 = vpop.eup %3126  ;;  %v4020_v56 = vld [vmem:[#allocation8 + $0xe0] ss:$16 sps:$4 sm:$0xff]   ;;  %v3329_v50 = vmov 7  }
 0x698   :  { %v1799_v42 = vmul.f32 %v3127_v46, %v3836_v6  ;;  %v1806_v6 = vpop.permute.xlu0 %1805  ;;  %4224 = vst [vmem:[#allocation21_spill] sm:$0xff] %v4020_v56  ;;  %3002 = vset.pattern.permute.xlu1 %v3329_v50  ;;  %3003 = vset.pattern.permute.xlu0 %v3329_v50 }
 0x699   :  { %v3129_v38 = vpop.eup %3128  ;;  %vm1807_vm7 = vcmp.eq.s32.totalorder %v1806_v6, %v3499_v51  ;;  %2321 = vperm.xlu1 %3002, %v4218_v18  }
 0x69a   :  { %v3901_v43 = vadd.f32 %v1800_v41, %v1799_v42  ;;  %v2688_v57 = vsel %vm1807_vm7, 1.0, %v4184_v0 }
 0x69c   :  { %3130 = vtanh.f32 %v3901_v43 }
 0x6a6   :  { %v3131_v40 = vpop.eup %3130 }
 0x6a7   :  { %v1803_v49 = vmul.f32 %v3131_v40, %v3129_v38 }
 0x6a9   :  { %v1810_v55 = vpack.c.bf16 %v1803_v49, %v1803_v49 }
 0x6ab   :  { %1844 = vmatmul.mubr.bf16.vlgmr.msra.gmra.mrb[40].mxu0 %v1810_v55  ;;  %1885 = vmatmul.mubr.bf16.vlgmr.msra.gmra.mrb[40].mxu1 %v1810_v55 }
 0x6ac   :  { %2907 = vmatpush1.bf16.msra.mxu0 %v3458_v9  ;;  %2919 = vmatpush1.bf16.msra.mxu1 %v3463_v13 }
 0x6ad   :  { %2909 = vmatprep.subr.bf16.mxu0 %v3481_v32  ;;  %2921 = vmatprep.subr.bf16.mxu1 %v3485_v36 }
 0x6ae   :  { %1960 = vmatprep.mubr.f32.mxu0 %v4184_v0  ;;  %2031 = vmatprep.mubr.f32.mxu1 %v4184_v0 }
 0x6b0   :  { %2911 = vmatpush1.bf16.msra.mxu0 %v3478_v30  ;;  %2923 = vmatpush1.bf16.msra.mxu1 %v3483_v34 }
 0x6b1   :  { %2913 = vmatprep.subr.bf16.mxu0 %v3506_v60  ;;  %2925 = vmatprep.subr.bf16.mxu1 %v3508_v62 }
 0x6b4   :  { %2915 = vmatpush1.bf16.msra.mxu0 %v3501_v52  ;;  %2927 = vmatpush1.bf16.msra.mxu1 %v3504_v59 }
 0x6b5   :  { %2689 = vmatprep.subr.msk.mxu0 %vm433_vm0, %v3512_v45  ;;  %2692 = vmatprep.subr.msk.mxu1 %vm433_vm0, %v3517_v4 }
 0x6b8   :  { %2690 = vmatpush1.msk.msra.mxu0 %vm433_vm0, %v3527_v58  ;;  %2693 = vmatpush1.msk.msra.mxu1 %vm433_vm0, %v3521_v5 }
 0x6b9   :  { %2691 = vmatmul.mubr.msk.f32.vlgmr.msra.gmra.mrb[44].mxu0 %vm429_vm2, %v2688_v57  ;;  %2694 = vmatmul.mubr.msk.f32.vlgmr.msra.gmra.mrb[44].mxu1 %vm429_vm2, %v2688_v57 }
 0x6ba   :  { %2069 = vmatprep.subr.bf16.mxu0 %v3928_v7  ;;  %2110 = vmatprep.subr.bf16.mxu1 %v3931_v53 }
 0x6bb   :  { %2070 = vmatpush1.bf16.msra.mxu0 %v3934_v8  ;;  %2111 = vmatpush1.bf16.msra.mxu1 %v3937_v10 }
 0x6bc   :  { %2071 = vmatprep.subr.bf16.mxu0 %v3940_v54  ;;  %2112 = vmatprep.subr.bf16.mxu1 %v3943_v12 }
 0x6bd   :  { %2101 = vmatprep.mubr.bf16.mxu0 %v4185_v15  ;;  %2142 = vmatprep.mubr.bf16.mxu1 %v4185_v15 }
 0x6bf   :  { %2072 = vmatpush1.bf16.msra.mxu0 %v3948_v17  ;;  %2113 = vmatpush1.bf16.msra.mxu1 %v3951_v19 }
 0x6c0   :  { %2073 = vmatprep.subr.bf16.mxu0 %v3954_v20  ;;  %2114 = vmatprep.subr.bf16.mxu1 %v3957_v21 }
 0x6c3   :  { %2074 = vmatpush1.bf16.msra.mxu0 %v3960_v22  ;;  %2115 = vmatpush1.bf16.msra.mxu1 %v3963_v23 }
 0x6c4   :  { %2075 = vmatprep.subr.bf16.mxu0 %v3966_v24  ;;  %2116 = vmatprep.subr.bf16.mxu1 %v3969_v25 }
 0x6c7   :  { %2076 = vmatpush1.bf16.msra.mxu0 %v3972_v26  ;;  %2117 = vmatpush1.bf16.msra.mxu1 %v3975_v27 }
 0x6c8   :  { %2077 = vmatprep.subr.bf16.mxu0 %v3978_v29  ;;  %2118 = vmatprep.subr.bf16.mxu1 %v3981_v31 }
 0x6cb   :  { %2078 = vmatpush1.bf16.msra.mxu0 %v3984_v33  ;;  %2119 = vmatpush1.bf16.msra.mxu1 %v3987_v35 }
 0x6cc   :  { %2079 = vmatprep.subr.bf16.mxu0 %v3990_v37  ;;  %2120 = vmatprep.subr.bf16.mxu1 %v3993_v44 }
 0x6cf   :  { %2080 = vmatpush1.bf16.msra.mxu0 %v3996_v1  ;;  %2121 = vmatpush1.bf16.msra.mxu1 %v3999_v28 }
 0x6d0   :  { %2081 = vmatprep.subr.bf16.mxu0 %v4002_v2  ;;  %2122 = vmatprep.subr.bf16.mxu1 %v4005_v63 }
 0x6d3   :  { %2082 = vmatpush1.bf16.msra.mxu0 %v4008_v61  ;;  %2123 = vmatpush1.bf16.msra.mxu1 %v4011_v3 }
 0x6d4   :  { %2083 = vmatprep.subr.bf16.mxu0 %v4014_v47  ;;  %2124 = vmatprep.subr.bf16.mxu1 %v4017_v48 }
 0x6d7   :  { %2084 = vmatpush1.bf16.msra.mxu0 %v4020_v56  ;;  %2125 = vmatpush1.bf16.msra.mxu1 %v4023_v11 }
 0x6d8   :  { %2929 = vmatprep.subr.bf16.mxu0 %v4216_v14  ;;  %2941 = vmatprep.subr.bf16.mxu1 %v4217_v16 }
 0x77e   :  { %v1845_v41 = vpop.f32.mrb[40].mxu0  ;;  %v1886_v46 = vpop.f32.mrb[40].mxu1 }
 0x77f   :  { %v1847_v39 = vpop.f32.mrb[41].mxu0  ;;  %v1888_v42 = vpop.f32.mrb[41].mxu1 }
 0x780   :  { %v1849_v38 = vpop.f32.mrb[42].mxu0  ;;  %v1890_v40 = vpop.f32.mrb[42].mxu1 }
 0x781   :  { %v1850_v49 = vpop.f32.mrb[43].mxu0  ;;  %v1891_v55 = vpop.f32.mrb[43].mxu1 }
 0x78c   :  { %v1962_v6 = vpop.f32.mrb[44].mxu0  ;;  %v2033_v57 = vpop.f32.mrb[44].mxu1 }
 0x78d   :  { %v1963_v11 = vadd.f32 %v1962_v6, %v1845_v41  ;;  %v2034_v56 = vadd.f32 %v2033_v57, %v1886_v46  ;;  %v1964_v14 = vpop.f32.mrb[45].mxu0  ;;  %v2035_v48 = vpop.f32.mrb[45].mxu1 }
 0x78e   :  { %v1965_v16 = vadd.f32 %v1964_v14, %v1847_v39  ;;  %v2036_v47 = vadd.f32 %v2035_v48, %v1888_v42 }
 0x78f   :  { %v2695_v3 = vmul.f32 -1.442695, %v1963_v11  ;;  %v2697_v18 = vmul.f32 -1.442695, %v2034_v56 }
 0x790   :  { %v2696_v50 = vmul.f32 -1.442695, %v1965_v16 }
 0x791   :  { %3132 = vpow2.f32 %v2695_v3 }
 0x792   :  { %3134 = vpow2.f32 %v2696_v50 }
 0x793   :  { %3136 = vtanh.f32 %v2036_v47 }
 0x794   :  { %3138 = vpow2.f32 %v2697_v18 }
 0x79b   :  { %v3133_v61 = vpop.eup %3132 }
 0x79c   :  { %v2047_v63 = vadd.f32 1.0, %v3133_v61  ;;  %v3135_v38 = vpop.eup %3134 }
 0x79d   :  { %v2048_v40 = vadd.f32 1.0, %v3135_v38  ;;  %v3137_v49 = vpop.eup %3136 }
 0x79e   :  { %3140 = vrcp.f32 %v2047_v63  ;;  %v3139_v41 = vpop.eup %3138 }
 0x79f   :  { %3142 = vrcp.f32 %v2048_v40  ;;  %v2049_v14 = vadd.f32 1.0, %v3139_v41 }
 0x7a1   :  { %3144 = vrcp.f32 %v2049_v14 }
 0x7a8   :  { %v3141_v46 = vpop.eup %3140 }
 0x7a9   :  { %v2058_v55 = vmul.f32 %v3141_v46, %v3137_v49  ;;  %v3143_v6 = vpop.eup %3142 }
 0x7aa   :  { %v2057_v48 = vmul.f32 %v3143_v6, %v3901_v43  ;;  %v2064_v43 = vpop.permute.xlu1 %2063 }
 0x7ab   :  { %v3145_v61 = vpop.eup %3144  ;;  %vm2065_vm8 = vcmp.eq.s32.totalorder %v2064_v43, %v3499_v51 }
 0x7ac   :  { %v4030_v16 = vadd.f32 %v2058_v55, %v2057_v48  ;;  %v2698_v63 = vsel %vm2065_vm8, 1.0, %v4184_v0 }
 0x7ae   :  { %3146 = vtanh.f32 %v4030_v16 }
 0x7b8   :  { %v3147_v3 = vpop.eup %3146 }
 0x7b9   :  { %v2061_v47 = vmul.f32 %v3147_v3, %v3145_v61 }
 0x7bb   :  { %v2068_v56 = vpack.c.bf16 %v2061_v47, %v2061_v47 }
 0x7bd   :  { %2102 = vmatmul.mubr.bf16.vlgmr.msra.gmra.mrb[48].mxu0 %v2068_v56  ;;  %2143 = vmatmul.mubr.bf16.vlgmr.msra.gmra.mrb[48].mxu1 %v2068_v56 }
 0x7be   :  { %2931 = vmatpush1.bf16.msra.mxu0 %v3458_v9  ;;  %2943 = vmatpush1.bf16.msra.mxu1 %v3463_v13 }
 0x7bf   :  { %2933 = vmatprep.subr.bf16.mxu0 %v3481_v32  ;;  %2945 = vmatprep.subr.bf16.mxu1 %v3485_v36 }
 0x7c0   :  { %2218 = vmatprep.mubr.f32.mxu0 %v4184_v0  ;;  %2289 = vmatprep.mubr.f32.mxu1 %v4184_v0 }
 0x7c2   :  { %2935 = vmatpush1.bf16.msra.mxu0 %v3478_v30  ;;  %2947 = vmatpush1.bf16.msra.mxu1 %v3483_v34 }
 0x7c3   :  { %2937 = vmatprep.subr.bf16.mxu0 %v3506_v60  ;;  %2949 = vmatprep.subr.bf16.mxu1 %v3508_v62 }
 0x7c6   :  { %2939 = vmatpush1.bf16.msra.mxu0 %v3501_v52  ;;  %2951 = vmatpush1.bf16.msra.mxu1 %v3504_v59 }
 0x7c7   :  { %2699 = vmatprep.subr.msk.mxu0 %vm433_vm0, %v3512_v45  ;;  %2702 = vmatprep.subr.msk.mxu1 %vm433_vm0, %v3517_v4 }
 0x7ca   :  { %2700 = vmatpush1.msk.msra.mxu0 %vm433_vm0, %v3527_v58  ;;  %2703 = vmatpush1.msk.msra.mxu1 %vm433_vm0, %v3521_v5 }
 0x7cb   :  { %2701 = vmatmul.mubr.msk.f32.vlgmr.msra.gmra.mrb[46].mxu0 %vm429_vm2, %v2698_v63  ;;  %2704 = vmatmul.mubr.msk.f32.vlgmr.msra.gmra.mrb[46].mxu1 %vm429_vm2, %v2698_v63 }
 0x7cc   :  { %2327 = vmatprep.subr.bf16.mxu0 %v3928_v7  ;;  %2368 = vmatprep.subr.bf16.mxu1 %v3931_v53  ;;  %v4227_v7 = vld [vmem:[#allocation17_spill] sm:$0xff]  ;;  %v4228_v53 = vld [vmem:[#allocation18_spill] sm:$0xff] }
 0x7cd   :  { %2328 = vmatpush1.bf16.msra.mxu0 %v3934_v8  ;;  %2369 = vmatpush1.bf16.msra.mxu1 %v3937_v10  ;;  %v4229_v8 = vld [vmem:[#allocation19_spill] sm:$0xff]  ;;  %v4230_v10 = vld [vmem:[#allocation20_spill] sm:$0xff] }
 0x7ce   :  { %2329 = vmatprep.subr.bf16.mxu0 %v3940_v54  ;;  %2370 = vmatprep.subr.bf16.mxu1 %v3943_v12  ;;  %v4231_v54 = vld [vmem:[#allocation21_spill] sm:$0xff]  ;;  %v4232_v12 = vld [vmem:[#allocation22_spill] sm:$0xff] }
 0x7cf   :  { %2359 = vmatprep.mubr.bf16.mxu0 %v4185_v15  ;;  %2400 = vmatprep.mubr.bf16.mxu1 %v4185_v15  ;;  %v4226_v15 = vld [vmem:[#allocation16_spill] sm:$0xff] }
 0x7d1   :  { %2330 = vmatpush1.bf16.msra.mxu0 %v3948_v17  ;;  %2371 = vmatpush1.bf16.msra.mxu1 %v3951_v19  ;;  %v4233_v17 = vld [vmem:[#allocation14_spill] sm:$0xff]  ;;  %v4234_v19 = vld [vmem:[#allocation15_spill] sm:$0xff] }
 0x7d2   :  { %2331 = vmatprep.subr.bf16.mxu0 %v3954_v20  ;;  %2372 = vmatprep.subr.bf16.mxu1 %v3957_v21 }
 0x7d5   :  { %2332 = vmatpush1.bf16.msra.mxu0 %v3960_v22  ;;  %2373 = vmatpush1.bf16.msra.mxu1 %v3963_v23 }
 0x7d6   :  { %2333 = vmatprep.subr.bf16.mxu0 %v3966_v24  ;;  %2374 = vmatprep.subr.bf16.mxu1 %v3969_v25 }
 0x7d9   :  { %2334 = vmatpush1.bf16.msra.mxu0 %v3972_v26  ;;  %2375 = vmatpush1.bf16.msra.mxu1 %v3975_v27 }
 0x7da   :  { %2335 = vmatprep.subr.bf16.mxu0 %v3978_v29  ;;  %2376 = vmatprep.subr.bf16.mxu1 %v3981_v31 }
 0x7dd   :  { %2336 = vmatpush1.bf16.msra.mxu0 %v3984_v33  ;;  %2377 = vmatpush1.bf16.msra.mxu1 %v3987_v35 }
 0x7de   :  { %2337 = vmatprep.subr.bf16.mxu0 %v3990_v37  ;;  %2378 = vmatprep.subr.bf16.mxu1 %v3993_v44 }
 0x7e1   :  { %2338 = vmatpush1.bf16.msra.mxu0 %v3996_v1  ;;  %2379 = vmatpush1.bf16.msra.mxu1 %v3999_v28 }
 0x7e2   :  { %2339 = vmatprep.subr.bf16.mxu0 %v4002_v2  ;;  %2380 = vmatprep.subr.bf16.mxu1 %v4226_v15 }
 0x7e5   :  { %2340 = vmatpush1.bf16.msra.mxu0 %v4227_v7  ;;  %2381 = vmatpush1.bf16.msra.mxu1 %v4228_v53 }
 0x7e6   :  { %2341 = vmatprep.subr.bf16.mxu0 %v4229_v8  ;;  %2382 = vmatprep.subr.bf16.mxu1 %v4230_v10 }
 0x7e9   :  { %2342 = vmatpush1.bf16.msra.mxu0 %v4231_v54  ;;  %2383 = vmatpush1.bf16.msra.mxu1 %v4232_v12 }
 0x7ea   :  { %2953 = vmatprep.subr.bf16.mxu0 %v4233_v17  ;;  %2965 = vmatprep.subr.bf16.mxu1 %v4234_v19 }
 0x890   :  { %v2103_v20 = vpop.f32.mrb[48].mxu0  ;;  %v2144_v21 = vpop.f32.mrb[48].mxu1 }
 0x891   :  { %v2105_v22 = vpop.f32.mrb[49].mxu0  ;;  %v2146_v23 = vpop.f32.mrb[49].mxu1 }
 0x892   :  { %v2107_v24 = vpop.f32.mrb[50].mxu0  ;;  %v2148_v25 = vpop.f32.mrb[50].mxu1 }
 0x893   :  { %v2108_v26 = vpop.f32.mrb[51].mxu0  ;;  %v2149_v27 = vpop.f32.mrb[51].mxu1 }
 0x894   :  { %v2718_v26 = vld [vmem:[%s4136_s5] ss:$0 sm:$0xff] }
 0x89e   :  { %v2220_v29 = vpop.f32.mrb[46].mxu0  ;;  %v2291_v31 = vpop.f32.mrb[46].mxu1 }
 0x89f   :  { %v2221_v33 = vadd.f32 %v2220_v29, %v2103_v20  ;;  %v2292_v35 = vadd.f32 %v2291_v31, %v2144_v21  ;;  %v2222_v37 = vpop.f32.mrb[47].mxu0  ;;  %v2293_v44 = vpop.f32.mrb[47].mxu1  ;;  %v2589_v31 = vstv %s4137_s6 }
 0x8a0   :  { %v2223_v1 = vadd.f32 %v2222_v37, %v2105_v22  ;;  %v2294_v28 = vadd.f32 %v2293_v44, %v2146_v23 }
 0x8a1   :  { %v2705_v2 = vmul.f32 -1.442695, %v2221_v33  ;;  %v2707_v39 = vmul.f32 -1.442695, %v2292_v35 }
 0x8a2   :  { %v2706_v11 = vmul.f32 -1.442695, %v2223_v1 }
 0x8a3   :  { %3148 = vpow2.f32 %v2705_v2 }
 0x8a4   :  { %3150 = vpow2.f32 %v2706_v11 }
 0x8a5   :  { %3152 = vtanh.f32 %v2294_v28 }
 0x8a6   :  { %3154 = vpow2.f32 %v2707_v39 }
 0x8ad   :  { %v3149_v42 = vpop.eup %3148 }
 0x8ae   :  { %v2305_v57 = vadd.f32 1.0, %v3149_v42  ;;  %v3151_v50 = vpop.eup %3150 }
 0x8af   :  { %v2306_v18 = vadd.f32 1.0, %v3151_v50  ;;  %v3153_v38 = vpop.eup %3152 }
 0x8b0   :  { %3156 = vrcp.f32 %v2305_v57  ;;  %v3155_v40 = vpop.eup %3154 }
 0x8b1   :  { %3158 = vrcp.f32 %v2306_v18  ;;  %v2307_v55 = vadd.f32 1.0, %v3155_v40 }
 0x8b3   :  { %3160 = vrcp.f32 %v2307_v55 }
 0x8ba   :  { %v3157_v49 = vpop.eup %3156 }
 0x8bb   :  { %v2316_v41 = vmul.f32 %v3157_v49, %v3153_v38  ;;  %v3159_v46 = vpop.eup %3158 }
 0x8bc   :  { %v2315_v6 = vmul.f32 %v3159_v46, %v4030_v16  ;;  %v2322_v16 = vpop.permute.xlu1 %2321 }
 0x8bd   :  { %v3161_v48 = vpop.eup %3160  ;;  %vm2323_vm9 = vcmp.eq.s32.totalorder %v2322_v16, %v3499_v51 }
 0x8be   :  { %v4094_v14 = vadd.f32 %v2316_v41, %v2315_v6 }
 0x8c0   :  { %3162 = vtanh.f32 %v4094_v14 }
 0x8ca   :  { %v3163_v61 = vpop.eup %3162 }
 0x8cb   :  { %v2319_v3 = vmul.f32 %v3163_v61, %v3161_v48 }
 0x8cd   :  { %v2326_v47 = vpack.c.bf16 %v2319_v3, %v2319_v3 }
 0x8cf   :  { %2360 = vmatmul.mubr.bf16.vlgmr.msra.gmra.mrb[52].mxu0 %v2326_v47  ;;  %2401 = vmatmul.mubr.bf16.vlgmr.msra.gmra.mrb[52].mxu1 %v2326_v47 }
 0x8d0   :  { %2955 = vmatpush1.bf16.msra.mxu0 %v3458_v9  ;;  %2967 = vmatpush1.bf16.msra.mxu1 %v3463_v13  ;;  %v2708_v9 = vsel %vm2323_vm9, 1.0, %v4184_v0 }
 0x8d1   :  { %2957 = vmatprep.subr.bf16.mxu0 %v3481_v32  ;;  %2969 = vmatprep.subr.bf16.mxu1 %v3485_v36 }
 0x8d2   :  { %2476 = vmatprep.mubr.f32.mxu0 %v4184_v0  ;;  %2547 = vmatprep.mubr.f32.mxu1 %v4184_v0 }
 0x8d4   :  { %2959 = vmatpush1.bf16.msra.mxu0 %v3478_v30  ;;  %2971 = vmatpush1.bf16.msra.mxu1 %v3483_v34 }
 0x8d5   :  { %2961 = vmatprep.subr.bf16.mxu0 %v3506_v60  ;;  %2973 = vmatprep.subr.bf16.mxu1 %v3508_v62 }
 0x8d8   :  { %2963 = vmatpush1.bf16.msra.mxu0 %v3501_v52  ;;  %2975 = vmatpush1.bf16.msra.mxu1 %v3504_v59 }
 0x8d9   :  { %2709 = vmatprep.subr.msk.mxu0 %vm433_vm0, %v3512_v45  ;;  %2712 = vmatprep.subr.msk.mxu1 %vm433_vm0, %v3517_v4 }
 0x8dc   :  { %2710 = vmatpush1.msk.msra.mxu0 %vm433_vm0, %v3527_v58  ;;  %2713 = vmatpush1.msk.msra.mxu1 %vm433_vm0, %v3521_v5 }
 0x8dd   :  { %2711 = vmatmul.mubr.msk.f32.vlgmr.msra.gmra.mrb[56].mxu0 %vm429_vm2, %v2708_v9  ;;  %2714 = vmatmul.mubr.msk.f32.vlgmr.msra.gmra.mrb[56].mxu1 %vm429_vm2, %v2708_v9 }
 0x9a2   :  { %v2361_v13 = vpop.f32.mrb[52].mxu0  ;;  %v2402_v30 = vpop.f32.mrb[52].mxu1 }
 0x9a3   :  { %v2363_v32 = vpop.f32.mrb[53].mxu0  ;;  %v2404_v34 = vpop.f32.mrb[53].mxu1 }
 0x9a4   :  { %v2365_v36 = vpop.f32.mrb[54].mxu0  ;;  %v2406_v51 = vpop.f32.mrb[54].mxu1 }
 0x9a5   :  { %v2366_v52 = vpop.f32.mrb[55].mxu0  ;;  %v2407_v59 = vpop.f32.mrb[55].mxu1 }
 0x9b0   :  { %v2478_v60 = vpop.f32.mrb[56].mxu0  ;;  %v2549_v62 = vpop.f32.mrb[56].mxu1 }
 0x9b1   :  { %v2479_v45 = vadd.f32 %v2478_v60, %v2361_v13  ;;  %v2550_v4 = vadd.f32 %v2549_v62, %v2402_v30  ;;  %v2480_v58 = vpop.f32.mrb[57].mxu0  ;;  %v2551_v0 = vpop.f32.mrb[57].mxu1 }
 0x9b2   :  { %v2481_v56 = vadd.f32 %v2480_v58, %v2363_v32  ;;  %v2552_v5 = vadd.f32 %v2551_v0, %v2404_v34 }
 0x9b3   :  { %v2715_v43 = vmul.f32 -1.442695, %v2479_v45  ;;  %v2717_v15 = vmul.f32 -1.442695, %v2550_v4 }
 0x9b4   :  { %v2716_v63 = vmul.f32 -1.442695, %v2481_v56 }
 0x9b5   :  { %3164 = vpow2.f32 %v2715_v43 }
 0x9b6   :  { %3166 = vpow2.f32 %v2716_v63 }
 0x9b7   :  { %3168 = vtanh.f32 %v2552_v5 }
 0x9b8   :  { %3170 = vpow2.f32 %v2717_v15 }
 0x9bf   :  { %v3165_v7 = vpop.eup %3164 }
 0x9c0   :  { %v2563_v53 = vadd.f32 1.0, %v3165_v7  ;;  %v3167_v8 = vpop.eup %3166 }
 0x9c1   :  { %v2564_v10 = vadd.f32 1.0, %v3167_v8  ;;  %v3169_v54 = vpop.eup %3168 }
 0x9c2   :  { %3172 = vrcp.f32 %v2563_v53  ;;  %v3171_v12 = vpop.eup %3170 }
 0x9c3   :  { %3174 = vrcp.f32 %v2564_v10  ;;  %v2565_v21 = vadd.f32 1.0, %v3171_v12 }
 0x9c5   :  { %3176 = vrcp.f32 %v2565_v21 }
 0x9cc   :  { %v3173_v17 = vpop.eup %3172 }
 0x9cd   :  { %v2574_v19 = vmul.f32 %v3173_v17, %v3169_v54  ;;  %v3175_v20 = vpop.eup %3174 }
 0x9ce   :  { %v2573_v22 = vmul.f32 %v3175_v20, %v4094_v14 }
 0x9cf   :  { %v3177_v24 = vpop.eup %3176 }
 0x9d0   :  { %v2575_v23 = vadd.f32 %v2574_v19, %v2573_v22 }
 0x9d2   :  { %3178 = vtanh.f32 %v2575_v23 }
 0x9dc   :  { %v3179_v25 = vpop.eup %3178 }
 0x9dd   :  { %v2577_v27 = vmul.f32 %v3179_v25, %v3177_v24 }
 0x9df   :  { %v2585_v29 = vmul.f32 %v2718_v26, %v2577_v27 }
 0x9e1   :  { %2586 = vadd.xlane.f32.xlu0 %v2585_v29 }
 0xa6e   :  { %v2587_v33 = vpop.xlane.xlu0 %2586 }
 0xa6f   :  { %v2590_v35 = vadd.f32 %v2589_v31, %v2587_v33 }
 0xa71   :  { %v2719_v37 = vmul.f32 -1.442695, %v2590_v35 }
 0xa73   :  { %3180 = vpow2.f32 %v2719_v37 }
 0xa7d   :  { %v3181_v44 = vpop.eup %3180 }
 0xa7e   :  { %v2594_v1 = vadd.f32 1.0, %v3181_v44 }
 0xa80   :  { %3182 = vrcp.f32 %v2594_v1 }
 0xa8a   :  { %v3183_v28 = vpop.eup %3182 }
 0xa8b   :  { %2598 = vst.msk [vmem:[%s4138_s7] sm:$0xff] %vm2597_vm10, %v3183_v28 }
 0xa8c   :  { %2603 = vsyncpa [#allocation4], 1 }
 0xa8d   :  { %2604 = vsyncpa [#allocation6], 1 }
 0xa8e   :  { %2605 = vsyncpa [#allocation9], 1 }

</bundles_post_ra>
